<compile_context>
chip_gen: v7x
topology: tpu7x:2x2x1
jax: 0.10.0
libtpu: 0.0.40
codegen_flags: <defaults>
</compile_context>

<pallas_src>
import math

import numpy as np

import jax
import jax.numpy as jnp
from jax.experimental import pallas as pl
from jax.experimental.pallas import tpu as pltpu

D_MODEL = 32
N_HEADS = 4
D_K = D_MODEL // N_HEADS
SEQ = 8
BATCH = 2
N_LAYERS = 2
LN_EPS = 1e-6


def encoder_kernel(x_ref, wqkv_ref, wo_ref, ln_ref, out_ref):
    # x_ref: (B*S, D) VMEM. wqkv_ref: (L, D, 3D) VMEM (scale folded into Q columns).
    # wo_ref: (L, D, D) VMEM. ln_ref: (2,) SMEM -> [alpha, bias].
    x = x_ref[...].astype(jnp.float32)                               # (BS, D)

    # TODO(synk): layers ModuleList is opaque; modeled as MHA-only blocks (no residual / FFN).
    for layer in range(N_LAYERS):                                    # static unroll, one launch
        wqkv = wqkv_ref[layer]                                       # (D, 3D), (in, out) layout
        wo = wo_ref[layer]                                           # (D, D),  (in, out) layout

        # Fused Q/K/V projection: one (BS, D) @ (D, 3D) MXU matmul (nn.Linear, bias=False).
        # 1/sqrt(d_k) is already folded into the Q columns of wqkv.
        qkv = jnp.dot(x, wqkv, preferred_element_type=jnp.float32)   # (BS, 3D)
        q = qkv[:, 0 * D_MODEL:1 * D_MODEL].reshape(BATCH, SEQ, D_MODEL)
        k = qkv[:, 1 * D_MODEL:2 * D_MODEL].reshape(BATCH, SEQ, D_MODEL)
        v = qkv[:, 2 * D_MODEL:3 * D_MODEL].reshape(BATCH, SEQ, D_MODEL)

        # Collapse the per-head loop: stack heads along the leading batch axis (n = h*B + b).
        # Leading-axis concats of (B, S, Dk) tiles are near-free; the score/context contractions
        # and the softmax then run once over all B*H rows instead of 4 (heads) separate passes.
        qh = jnp.concatenate([q[:, :, h * D_K:(h + 1) * D_K] for h in range(N_HEADS)], axis=0)
        kh = jnp.concatenate([k[:, :, h * D_K:(h + 1) * D_K] for h in range(N_HEADS)], axis=0)
        vh = jnp.concatenate([v[:, :, h * D_K:(h + 1) * D_K] for h in range(N_HEADS)], axis=0)
        # (B*H, S, Dk) each

        # Q @ K^T via transposed contraction (no in-kernel transpose), batched over B*H.
        s = jnp.einsum("nqd,nkd->nqk", qh, kh,
                       preferred_element_type=jnp.float32)           # (B*H, S, S)
        # NOTE: reference's masked_fill result is discarded -> mask intentionally unused.
        s = s - jnp.max(s, axis=-1, keepdims=True)
        p = jnp.exp(s)
        p = p / jnp.sum(p, axis=-1, keepdims=True)                   # exact divide (review item)
        # dropout: identity (eval / p = 0.0)
        ctx = jnp.einsum("nqk,nkd->nqd", p, vh,
                         preferred_element_type=jnp.float32)         # (B*H, S, Dk)

        # Back to (B*S, D): split heads off the leading axis, concat along features.
        # Matches the reference's transpose(1,2).view(B, S, h*d_k) head concatenation.
        ctx = jnp.concatenate(
            [ctx[h * BATCH:(h + 1) * BATCH] for h in range(N_HEADS)], axis=-1)   # (B, S, D)
        ctx = ctx.reshape(BATCH * SEQ, D_MODEL)
        x = jnp.dot(ctx, wo, preferred_element_type=jnp.float32)     # (BS, D)

    # Final LayerNormalization: alpha * (x - mean) / (std + eps) + bias, unbiased std (ddof=1).
    mean = jnp.mean(x, axis=-1, keepdims=True)
    d = x - mean
    var = jnp.sum(d * d, axis=-1, keepdims=True) / (D_MODEL - 1)
    std = jnp.sqrt(var)
    alpha = ln_ref[0]
    bias = ln_ref[1]
    out_ref[...] = (alpha * d / (std + LN_EPS) + bias).astype(out_ref.dtype)


def make_encoder_params(wq_layers, wk_layers, wv_layers, wo_layers, ln_alpha, ln_bias):
    """One-time weight preparation, hoisted out of the forward hot path (review item 1).

    PyTorch nn.Linear stores (out_features, in_features); transpose to (in, out), fuse Q/K/V
    into one (D, 3D) matrix per layer and fold 1/sqrt(d_k) into the Q columns (review item 2).
    """
    scale = 1.0 / math.sqrt(D_K)
    wqkv = jnp.stack([
        jnp.concatenate([wq.T * scale, wk.T, wv.T], axis=1)
        for wq, wk, wv in zip(wq_layers, wk_layers, wv_layers)
    ]).astype(jnp.float32)                                           # (L, D, 3D)
    wo = jnp.stack([w.T for w in wo_layers]).astype(jnp.float32)     # (L, D, D)
    ln = jnp.concatenate([jnp.reshape(ln_alpha, (-1,)),
                          jnp.reshape(ln_bias, (-1,))]).astype(jnp.float32)       # (2,)
    return wqkv, wo, ln


@jax.jit
def encoder_forward(x, wqkv, wo, ln, mask=None):
    """Encoder.forward(x, mask) with pre-prepared weights. mask is a no-op (see header)."""
    del mask
    B, S, D = x.shape
    assert (B, S, D) == (BATCH, SEQ, D_MODEL) and wqkv.shape[0] == N_LAYERS

    out2d = pl.pallas_call(
        encoder_kernel,
        out_shape=jax.ShapeDtypeStruct((B * S, D), x.dtype),
        in_specs=[
            pl.BlockSpec(memory_space=pltpu.MemorySpace.VMEM),   # x, whole batch in one step
            pl.BlockSpec(memory_space=pltpu.MemorySpace.VMEM),   # fused, pre-transposed QKV weights
            pl.BlockSpec(memory_space=pltpu.MemorySpace.VMEM),   # pre-transposed output-proj weights
            pl.BlockSpec(memory_space=pltpu.MemorySpace.SMEM),   # layer-norm scalars (alpha, bias)
        ],
        out_specs=pl.BlockSpec(memory_space=pltpu.MemorySpace.VMEM),
    )(x.reshape(B * S, D), wqkv, wo, ln)
    return out2d.reshape(B, S, D)


def reference_encoder(x, wq_layers, wk_layers, wv_layers, wo_layers, ln_alpha, ln_bias, mask=None):
    """Float64 NumPy reference mirroring the PyTorch Encoder forward (eval, mask no-op)."""
    del mask
    h = np.asarray(x, np.float64)
    B, S, D = h.shape
    for wq, wk, wv, wo in zip(wq_layers, wk_layers, wv_layers, wo_layers):
        wq, wk, wv, wo = (np.asarray(w, np.float64) for w in (wq, wk, wv, wo))
        Q = (h @ wq.T).reshape(B, S, N_HEADS, D_K).transpose(0, 2, 1, 3)
        K = (h @ wk.T).reshape(B, S, N_HEADS, D_K).transpose(0, 2, 1, 3)
        V = (h @ wv.T).reshape(B, S, N_HEADS, D_K).transpose(0, 2, 1, 3)
        s = (Q @ K.transpose(0, 1, 3, 2)) / math.sqrt(D_K)
        s = s - s.max(axis=-1, keepdims=True)
        p = np.exp(s)
        p = p / p.sum(axis=-1, keepdims=True)
        ctx = (p @ V).transpose(0, 2, 1, 3).reshape(B, S, D)
        h = ctx @ wo.T
    mean = h.mean(axis=-1, keepdims=True)
    std = h.std(axis=-1, keepdims=True, ddof=1)                      # torch std: unbiased
    alpha = float(np.asarray(ln_alpha).reshape(-1)[0])
    bias = float(np.asarray(ln_bias).reshape(-1)[0])
    return alpha * (h - mean) / (std + LN_EPS) + bias


if __name__ == "__main__":
    key = jax.random.PRNGKey(0)
    keys = jax.random.split(key, 1 + 4 * N_LAYERS)
    x = jax.random.normal(keys[0], (BATCH, SEQ, D_MODEL), jnp.float32)

    # Deterministic weight init (PyTorch Linear-style uniform bounds), per layer.
    bound = 1.0 / math.sqrt(D_MODEL)
    wq_layers, wk_layers, wv_layers, wo_layers = [], [], [], []
    for l in range(N_LAYERS):
        k0, k1, k2, k3 = keys[1 + 4 * l: 5 + 4 * l]
        wq_layers.append(jax.random.uniform(k0, (D_MODEL, D_MODEL), jnp.float32, -bound, bound))
        wk_layers.append(jax.random.uniform(k1, (D_MODEL, D_MODEL), jnp.float32, -bound, bound))
        wv_layers.append(jax.random.uniform(k2, (D_MODEL, D_MODEL), jnp.float32, -bound, bound))
        wo_layers.append(jax.random.uniform(k3, (D_MODEL, D_MODEL), jnp.float32, -bound, bound))

    ln_alpha = jnp.ones((1,), jnp.float32)    # nn.Parameter(torch.ones(1))
    ln_bias = jnp.zeros((1,), jnp.float32)    # nn.Parameter(torch.zeros(1))
    mask = None                               # masked_fill result discarded in the reference

    # One-time weight prep (hoisted out of the hot path); forward is a single jitted dispatch.
    wqkv, wo, ln = make_encoder_params(wq_layers, wk_layers, wv_layers, wo_layers,
                                       ln_alpha, ln_bias)

    out = encoder_forward(x, wqkv, wo, ln, mask)
    out = jax.block_until_ready(out)

    ref = reference_encoder(x, wq_layers, wk_layers, wv_layers, wo_layers, ln_alpha, ln_bias, mask)
    assert out.shape == (BATCH, SEQ, D_MODEL)
    # Tolerance tightened from 1e-2 to 1e-4: softmax / LayerNorm now use exact divides
    # (no EUP approximate reciprocal), per the performance review.
    assert np.allclose(np.asarray(out, np.float64), ref, atol=1e-4, rtol=1e-4), \
        "Pallas output mismatch vs reference"

    print("KERNEL_OK")
</pallas_src>

<mosaic_0001>
module attributes {stable_mosaic.version = 11 : i64} {
  func.func @encoder_kernel(%arg0: memref<16x32xf32, #tpu.memory_space<vmem>>, %arg1: memref<2x32x96xf32, #tpu.memory_space<vmem>>, %arg2: memref<2x32x32xf32, #tpu.memory_space<vmem>>, %arg3: memref<2xf32, #tpu.memory_space<smem>>, %arg4: memref<16x32xf32, #tpu.memory_space<vmem>>) attributes {dimension_semantics = [], scalar_prefetch = 0 : i64, scratch_operands = 0 : i64, tpu.core_type = #tpu.core_type<tc>} {
    %c0 = arith.constant 0 : index
    %c0_0 = arith.constant 0 : index
    %0 = vector.load %arg0[%c0, %c0_0] : memref<16x32xf32, #tpu.memory_space<vmem>>, vector<16x32xf32>
    %c0_1 = arith.constant 0 : index
    %c0_2 = arith.constant 0 : index
    %c0_3 = arith.constant 0 : index
    %1 = vector.load %arg1[%c0_1, %c0_2, %c0_3] : memref<2x32x96xf32, #tpu.memory_space<vmem>>, vector<1x32x96xf32>
    %2 = vector.shape_cast %1 : vector<1x32x96xf32> to vector<32x96xf32>
    %c0_4 = arith.constant 0 : index
    %c0_5 = arith.constant 0 : index
    %c0_6 = arith.constant 0 : index
    %3 = vector.load %arg2[%c0_4, %c0_5, %c0_6] : memref<2x32x32xf32, #tpu.memory_space<vmem>>, vector<1x32x32xf32>
    %4 = vector.shape_cast %3 : vector<1x32x32xf32> to vector<32x32xf32>
    %cst = arith.constant dense<0.000000e+00> : vector<16x96xf32>
    %5 = tpu.matmul %0, %2, %cst {dimension_numbers = #tpu.dot_dimension_numbers<[1], [0], [0], [1], [0, 0, 1, 1], [], []>} : vector<16x32xf32>, vector<32x96xf32>, vector<16x96xf32> -> vector<16x96xf32>
    %6 = vector.extract_strided_slice %5 {offsets = [0, 0], sizes = [16, 32], strides = [1, 1]} : vector<16x96xf32> to vector<16x32xf32>
    %7 = vector.shape_cast %6 : vector<16x32xf32> to vector<2x8x32xf32>
    %8 = vector.extract_strided_slice %5 {offsets = [0, 32], sizes = [16, 32], strides = [1, 1]} : vector<16x96xf32> to vector<16x32xf32>
    %9 = vector.shape_cast %8 : vector<16x32xf32> to vector<2x8x32xf32>
    %10 = vector.extract_strided_slice %5 {offsets = [0, 64], sizes = [16, 32], strides = [1, 1]} : vector<16x96xf32> to vector<16x32xf32>
    %11 = vector.shape_cast %10 : vector<16x32xf32> to vector<2x8x32xf32>
    %12 = vector.extract_strided_slice %7 {offsets = [0, 0, 0], sizes = [2, 8, 8], strides = [1, 1, 1]} : vector<2x8x32xf32> to vector<2x8x8xf32>
    %13 = vector.extract_strided_slice %7 {offsets = [0, 0, 8], sizes = [2, 8, 8], strides = [1, 1, 1]} : vector<2x8x32xf32> to vector<2x8x8xf32>
    %14 = vector.extract_strided_slice %7 {offsets = [0, 0, 16], sizes = [2, 8, 8], strides = [1, 1, 1]} : vector<2x8x32xf32> to vector<2x8x8xf32>
    %15 = vector.extract_strided_slice %7 {offsets = [0, 0, 24], sizes = [2, 8, 8], strides = [1, 1, 1]} : vector<2x8x32xf32> to vector<2x8x8xf32>
    %16 = tpu.concatenate %12, %13, %14, %15 in 0 : vector<2x8x8xf32>, vector<2x8x8xf32>, vector<2x8x8xf32>, vector<2x8x8xf32> -> vector<8x8x8xf32>
    %17 = vector.extract_strided_slice %9 {offsets = [0, 0, 0], sizes = [2, 8, 8], strides = [1, 1, 1]} : vector<2x8x32xf32> to vector<2x8x8xf32>
    %18 = vector.extract_strided_slice %9 {offsets = [0, 0, 8], sizes = [2, 8, 8], strides = [1, 1, 1]} : vector<2x8x32xf32> to vector<2x8x8xf32>
    %19 = vector.extract_strided_slice %9 {offsets = [0, 0, 16], sizes = [2, 8, 8], strides = [1, 1, 1]} : vector<2x8x32xf32> to vector<2x8x8xf32>
    %20 = vector.extract_strided_slice %9 {offsets = [0, 0, 24], sizes = [2, 8, 8], strides = [1, 1, 1]} : vector<2x8x32xf32> to vector<2x8x8xf32>
    %21 = tpu.concatenate %17, %18, %19, %20 in 0 : vector<2x8x8xf32>, vector<2x8x8xf32>, vector<2x8x8xf32>, vector<2x8x8xf32> -> vector<8x8x8xf32>
    %22 = vector.extract_strided_slice %11 {offsets = [0, 0, 0], sizes = [2, 8, 8], strides = [1, 1, 1]} : vector<2x8x32xf32> to vector<2x8x8xf32>
    %23 = vector.extract_strided_slice %11 {offsets = [0, 0, 8], sizes = [2, 8, 8], strides = [1, 1, 1]} : vector<2x8x32xf32> to vector<2x8x8xf32>
    %24 = vector.extract_strided_slice %11 {offsets = [0, 0, 16], sizes = [2, 8, 8], strides = [1, 1, 1]} : vector<2x8x32xf32> to vector<2x8x8xf32>
    %25 = vector.extract_strided_slice %11 {offsets = [0, 0, 24], sizes = [2, 8, 8], strides = [1, 1, 1]} : vector<2x8x32xf32> to vector<2x8x8xf32>
    %26 = tpu.concatenate %22, %23, %24, %25 in 0 : vector<2x8x8xf32>, vector<2x8x8xf32>, vector<2x8x8xf32>, vector<2x8x8xf32> -> vector<8x8x8xf32>
    "tpu.trace_start"() <{level = 10 : i32, message = "nqd,nkd->nqk"}> : () -> ()
    %cst_7 = arith.constant dense<0.000000e+00> : vector<8x8x8xf32>
    %27 = tpu.matmul %16, %21, %cst_7 {dimension_numbers = #tpu.dot_dimension_numbers<[2], [2], [1], [1], [0, 0, 0, 1, 1, 1], [0], [0]>} : vector<8x8x8xf32>, vector<8x8x8xf32>, vector<8x8x8xf32> -> vector<8x8x8xf32>
    "tpu.trace_stop"() : () -> ()
    %cst_8 = arith.constant dense<0xFF800000> : vector<8x8xf32>
    %28 = vector.multi_reduction <maximumf>, %27, %cst_8 [2] : vector<8x8x8xf32> to vector<8x8xf32>
    %29 = vector.shape_cast %28 : vector<8x8xf32> to vector<8x8x1xf32>
    %30 = vector.broadcast %29 : vector<8x8x1xf32> to vector<8x8x8xf32>
    %31 = arith.subf %27, %30 : vector<8x8x8xf32>
    %32 = math.exp %31 : vector<8x8x8xf32>
    %cst_9 = arith.constant dense<0.000000e+00> : vector<8x8xf32>
    %33 = vector.multi_reduction <add>, %32, %cst_9 [2] : vector<8x8x8xf32> to vector<8x8xf32>
    %34 = vector.shape_cast %33 : vector<8x8xf32> to vector<8x8x1xf32>
    %35 = vector.broadcast %34 : vector<8x8x1xf32> to vector<8x8x8xf32>
    %36 = arith.divf %32, %35 : vector<8x8x8xf32>
    "tpu.trace_start"() <{level = 10 : i32, message = "nqk,nkd->nqd"}> : () -> ()
    %cst_10 = arith.constant dense<0.000000e+00> : vector<8x8x8xf32>
    %37 = tpu.matmul %36, %26, %cst_10 {dimension_numbers = #tpu.dot_dimension_numbers<[2], [1], [1], [2], [0, 0, 0, 1, 1, 2], [0], [0]>} : vector<8x8x8xf32>, vector<8x8x8xf32>, vector<8x8x8xf32> -> vector<8x8x8xf32>
    "tpu.trace_stop"() : () -> ()
    %38 = vector.extract_strided_slice %37 {offsets = [0, 0, 0], sizes = [2, 8, 8], strides = [1, 1, 1]} : vector<8x8x8xf32> to vector<2x8x8xf32>
    %39 = vector.extract_strided_slice %37 {offsets = [2, 0, 0], sizes = [2, 8, 8], strides = [1, 1, 1]} : vector<8x8x8xf32> to vector<2x8x8xf32>
    %40 = vector.extract_strided_slice %37 {offsets = [4, 0, 0], sizes = [2, 8, 8], strides = [1, 1, 1]} : vector<8x8x8xf32> to vector<2x8x8xf32>
    %41 = vector.extract_strided_slice %37 {offsets = [6, 0, 0], sizes = [2, 8, 8], strides = [1, 1, 1]} : vector<8x8x8xf32> to vector<2x8x8xf32>
    %42 = tpu.concatenate %38, %39, %40, %41 in 2 : vector<2x8x8xf32>, vector<2x8x8xf32>, vector<2x8x8xf32>, vector<2x8x8xf32> -> vector<2x8x32xf32>
    %43 = vector.shape_cast %42 : vector<2x8x32xf32> to vector<16x32xf32>
    %cst_11 = arith.constant dense<0.000000e+00> : vector<16x32xf32>
    %44 = tpu.matmul %43, %4, %cst_11 {dimension_numbers = #tpu.dot_dimension_numbers<[1], [0], [0], [1], [0, 0, 1, 1], [], []>} : vector<16x32xf32>, vector<32x32xf32>, vector<16x32xf32> -> vector<16x32xf32>
    %c1 = arith.constant 1 : index
    %c0_12 = arith.constant 0 : index
    %c0_13 = arith.constant 0 : index
    %45 = vector.load %arg1[%c1, %c0_12, %c0_13] : memref<2x32x96xf32, #tpu.memory_space<vmem>>, vector<1x32x96xf32>
    %46 = vector.shape_cast %45 : vector<1x32x96xf32> to vector<32x96xf32>
    %c1_14 = arith.constant 1 : index
    %c0_15 = arith.constant 0 : index
    %c0_16 = arith.constant 0 : index
    %47 = vector.load %arg2[%c1_14, %c0_15, %c0_16] : memref<2x32x32xf32, #tpu.memory_space<vmem>>, vector<1x32x32xf32>
    %48 = vector.shape_cast %47 : vector<1x32x32xf32> to vector<32x32xf32>
    %cst_17 = arith.constant dense<0.000000e+00> : vector<16x96xf32>
    %49 = tpu.matmul %44, %46, %cst_17 {dimension_numbers = #tpu.dot_dimension_numbers<[1], [0], [0], [1], [0, 0, 1, 1], [], []>} : vector<16x32xf32>, vector<32x96xf32>, vector<16x96xf32> -> vector<16x96xf32>
    %50 = vector.extract_strided_slice %49 {offsets = [0, 0], sizes = [16, 32], strides = [1, 1]} : vector<16x96xf32> to vector<16x32xf32>
    %51 = vector.shape_cast %50 : vector<16x32xf32> to vector<2x8x32xf32>
    %52 = vector.extract_strided_slice %49 {offsets = [0, 32], sizes = [16, 32], strides = [1, 1]} : vector<16x96xf32> to vector<16x32xf32>
    %53 = vector.shape_cast %52 : vector<16x32xf32> to vector<2x8x32xf32>
    %54 = vector.extract_strided_slice %49 {offsets = [0, 64], sizes = [16, 32], strides = [1, 1]} : vector<16x96xf32> to vector<16x32xf32>
    %55 = vector.shape_cast %54 : vector<16x32xf32> to vector<2x8x32xf32>
    %56 = vector.extract_strided_slice %51 {offsets = [0, 0, 0], sizes = [2, 8, 8], strides = [1, 1, 1]} : vector<2x8x32xf32> to vector<2x8x8xf32>
    %57 = vector.extract_strided_slice %51 {offsets = [0, 0, 8], sizes = [2, 8, 8], strides = [1, 1, 1]} : vector<2x8x32xf32> to vector<2x8x8xf32>
    %58 = vector.extract_strided_slice %51 {offsets = [0, 0, 16], sizes = [2, 8, 8], strides = [1, 1, 1]} : vector<2x8x32xf32> to vector<2x8x8xf32>
    %59 = vector.extract_strided_slice %51 {offsets = [0, 0, 24], sizes = [2, 8, 8], strides = [1, 1, 1]} : vector<2x8x32xf32> to vector<2x8x8xf32>
    %60 = tpu.concatenate %56, %57, %58, %59 in 0 : vector<2x8x8xf32>, vector<2x8x8xf32>, vector<2x8x8xf32>, vector<2x8x8xf32> -> vector<8x8x8xf32>
    %61 = vector.extract_strided_slice %53 {offsets = [0, 0, 0], sizes = [2, 8, 8], strides = [1, 1, 1]} : vector<2x8x32xf32> to vector<2x8x8xf32>
    %62 = vector.extract_strided_slice %53 {offsets = [0, 0, 8], sizes = [2, 8, 8], strides = [1, 1, 1]} : vector<2x8x32xf32> to vector<2x8x8xf32>
    %63 = vector.extract_strided_slice %53 {offsets = [0, 0, 16], sizes = [2, 8, 8], strides = [1, 1, 1]} : vector<2x8x32xf32> to vector<2x8x8xf32>
    %64 = vector.extract_strided_slice %53 {offsets = [0, 0, 24], sizes = [2, 8, 8], strides = [1, 1, 1]} : vector<2x8x32xf32> to vector<2x8x8xf32>
    %65 = tpu.concatenate %61, %62, %63, %64 in 0 : vector<2x8x8xf32>, vector<2x8x8xf32>, vector<2x8x8xf32>, vector<2x8x8xf32> -> vector<8x8x8xf32>
    %66 = vector.extract_strided_slice %55 {offsets = [0, 0, 0], sizes = [2, 8, 8], strides = [1, 1, 1]} : vector<2x8x32xf32> to vector<2x8x8xf32>
    %67 = vector.extract_strided_slice %55 {offsets = [0, 0, 8], sizes = [2, 8, 8], strides = [1, 1, 1]} : vector<2x8x32xf32> to vector<2x8x8xf32>
    %68 = vector.extract_strided_slice %55 {offsets = [0, 0, 16], sizes = [2, 8, 8], strides = [1, 1, 1]} : vector<2x8x32xf32> to vector<2x8x8xf32>
    %69 = vector.extract_strided_slice %55 {offsets = [0, 0, 24], sizes = [2, 8, 8], strides = [1, 1, 1]} : vector<2x8x32xf32> to vector<2x8x8xf32>
    %70 = tpu.concatenate %66, %67, %68, %69 in 0 : vector<2x8x8xf32>, vector<2x8x8xf32>, vector<2x8x8xf32>, vector<2x8x8xf32> -> vector<8x8x8xf32>
    "tpu.trace_start"() <{level = 10 : i32, message = "nqd,nkd->nqk"}> : () -> ()
    %cst_18 = arith.constant dense<0.000000e+00> : vector<8x8x8xf32>
    %71 = tpu.matmul %60, %65, %cst_18 {dimension_numbers = #tpu.dot_dimension_numbers<[2], [2], [1], [1], [0, 0, 0, 1, 1, 1], [0], [0]>} : vector<8x8x8xf32>, vector<8x8x8xf32>, vector<8x8x8xf32> -> vector<8x8x8xf32>
    "tpu.trace_stop"() : () -> ()
    %cst_19 = arith.constant dense<0xFF800000> : vector<8x8xf32>
    %72 = vector.multi_reduction <maximumf>, %71, %cst_19 [2] : vector<8x8x8xf32> to vector<8x8xf32>
    %73 = vector.shape_cast %72 : vector<8x8xf32> to vector<8x8x1xf32>
    %74 = vector.broadcast %73 : vector<8x8x1xf32> to vector<8x8x8xf32>
    %75 = arith.subf %71, %74 : vector<8x8x8xf32>
    %76 = math.exp %75 : vector<8x8x8xf32>
    %cst_20 = arith.constant dense<0.000000e+00> : vector<8x8xf32>
    %77 = vector.multi_reduction <add>, %76, %cst_20 [2] : vector<8x8x8xf32> to vector<8x8xf32>
    %78 = vector.shape_cast %77 : vector<8x8xf32> to vector<8x8x1xf32>
    %79 = vector.broadcast %78 : vector<8x8x1xf32> to vector<8x8x8xf32>
    %80 = arith.divf %76, %79 : vector<8x8x8xf32>
    "tpu.trace_start"() <{level = 10 : i32, message = "nqk,nkd->nqd"}> : () -> ()
    %cst_21 = arith.constant dense<0.000000e+00> : vector<8x8x8xf32>
    %81 = tpu.matmul %80, %70, %cst_21 {dimension_numbers = #tpu.dot_dimension_numbers<[2], [1], [1], [2], [0, 0, 0, 1, 1, 2], [0], [0]>} : vector<8x8x8xf32>, vector<8x8x8xf32>, vector<8x8x8xf32> -> vector<8x8x8xf32>
    "tpu.trace_stop"() : () -> ()
    %82 = vector.extract_strided_slice %81 {offsets = [0, 0, 0], sizes = [2, 8, 8], strides = [1, 1, 1]} : vector<8x8x8xf32> to vector<2x8x8xf32>
    %83 = vector.extract_strided_slice %81 {offsets = [2, 0, 0], sizes = [2, 8, 8], strides = [1, 1, 1]} : vector<8x8x8xf32> to vector<2x8x8xf32>
    %84 = vector.extract_strided_slice %81 {offsets = [4, 0, 0], sizes = [2, 8, 8], strides = [1, 1, 1]} : vector<8x8x8xf32> to vector<2x8x8xf32>
    %85 = vector.extract_strided_slice %81 {offsets = [6, 0, 0], sizes = [2, 8, 8], strides = [1, 1, 1]} : vector<8x8x8xf32> to vector<2x8x8xf32>
    %86 = tpu.concatenate %82, %83, %84, %85 in 2 : vector<2x8x8xf32>, vector<2x8x8xf32>, vector<2x8x8xf32>, vector<2x8x8xf32> -> vector<2x8x32xf32>
    %87 = vector.shape_cast %86 : vector<2x8x32xf32> to vector<16x32xf32>
    %cst_22 = arith.constant dense<0.000000e+00> : vector<16x32xf32>
    %88 = tpu.matmul %87, %48, %cst_22 {dimension_numbers = #tpu.dot_dimension_numbers<[1], [0], [0], [1], [0, 0, 1, 1], [], []>} : vector<16x32xf32>, vector<32x32xf32>, vector<16x32xf32> -> vector<16x32xf32>
    %cst_23 = arith.constant dense<0.000000e+00> : vector<16xf32>
    %89 = vector.multi_reduction <add>, %88, %cst_23 [1] : vector<16x32xf32> to vector<16xf32>
    %90 = vector.shape_cast %89 : vector<16xf32> to vector<16x1xf32>
    %cst_24 = arith.constant 3.200000e+01 : f32
    %91 = vector.broadcast %cst_24 : f32 to vector<16x1xf32>
    %92 = arith.divf %90, %91 : vector<16x1xf32>
    %93 = vector.broadcast %92 : vector<16x1xf32> to vector<16x32xf32>
    %94 = arith.subf %88, %93 : vector<16x32xf32>
    %95 = arith.mulf %94, %94 : vector<16x32xf32>
    %cst_25 = arith.constant dense<0.000000e+00> : vector<16xf32>
    %96 = vector.multi_reduction <add>, %95, %cst_25 [1] : vector<16x32xf32> to vector<16xf32>
    %97 = vector.shape_cast %96 : vector<16xf32> to vector<16x1xf32>
    %cst_26 = arith.constant 3.100000e+01 : f32
    %98 = vector.broadcast %cst_26 : f32 to vector<16x1xf32>
    %99 = arith.divf %97, %98 : vector<16x1xf32>
    %100 = math.sqrt %99 : vector<16x1xf32>
    %c0_27 = arith.constant 0 : index
    %101 = memref.load %arg3[%c0_27] : memref<2xf32, #tpu.memory_space<smem>>
    %c1_28 = arith.constant 1 : index
    %102 = memref.load %arg3[%c1_28] : memref<2xf32, #tpu.memory_space<smem>>
    %103 = vector.broadcast %101 : f32 to vector<16x32xf32>
    %104 = arith.mulf %103, %94 : vector<16x32xf32>
    %cst_29 = arith.constant 9.99999997E-7 : f32
    %105 = vector.broadcast %cst_29 : f32 to vector<16x1xf32>
    %106 = arith.addf %100, %105 : vector<16x1xf32>
    %107 = vector.broadcast %106 : vector<16x1xf32> to vector<16x32xf32>
    %108 = arith.divf %104, %107 : vector<16x32xf32>
    %109 = vector.broadcast %102 : f32 to vector<16x32xf32>
    %110 = arith.addf %108, %109 : vector<16x32xf32>
    %c0_30 = arith.constant 0 : index
    %c0_31 = arith.constant 0 : index
    %111 = vector.load %arg4[%c0_30, %c0_31] : memref<16x32xf32, #tpu.memory_space<vmem>>, vector<16x32xf32>
    tpu.vector_store %arg4[%c0_30, %c0_31], %110 {strides = array<i32>} : memref<16x32xf32, #tpu.memory_space<vmem>>, vector<16x32xf32>,
    return
  }
}

</mosaic_0001>

<bundles_post_ra>
// kernel: encoder_forward.1
= control target key start
LH: loop header
LB: loop body
LE: loop exit
PB: predicated region body
PF: predicated region fallthrough
CT: control target
= control target key end

     0   :  { %9 = vsyncpa [#allocation3], 0  ;;  %s4249_s0 = inlined_call_operand.hbm [shape: f32[16,32], index: 0, kind: input, shape index: {}]   ;;  %s4250_s1 = inlined_call_operand.hbm [shape: f32[2,32,96], index: 1, kind: input, shape index: {}]   ;;  %s4251_s2 = inlined_call_operand.hbm [shape: f32[2,32,32], index: 2, kind: input, shape index: {}]   ;;  %s4252_s3 = inlined_call_operand.vmem [shape: f32[2], index: 3, kind: input, shape index: {}]   ;;  %s4253_s4 = inlined_call_operand.hbm [shape: f32[16,32], index: 4, kind: output, shape index: {}]  }
   0x1   :  { %10 = vsyncpa [#allocation7], 0 }
   0x2   :  { %11 = vsyncpa [#allocation5], 0 }
   0x3   :  { %12 = vsyncpa [#allocation4], 0  ;;  %s3764_s15 = smov [#allocation6]   ;;  %s3765_s17 = smov [#allocation2]  }
   0x4   :  { %s30_s16 = sshll.u32 %s3764_s15, 4  ;;  %s18_s18 = sshll.u32 %s3765_s17, 4  ;;  %s31_s16 = int_to_ptr.vmem [resolvable:$true] %s30_s16  ;;  %s3805_s18 = int_to_ptr.vmem [resolvable:$true] %s18_s18 }
   0x5   :  { %s3656_s21 = scalar_lea.hbm %s4250_s1, 1024 }
   0x6   :  { %p3657_p0 = scmp.ne.s32.totalorder %s4250_s1, %s3656_s21  ;;  %p3660_p1 = scmp.lt.u32.totalorder %s3656_s21, %s4250_s1 }
   0x8   :  { %p3662_p2 = pnand %p3660_p1, %p3657_p0 }
   0xa   :  { %3665 = shalt.err (!%p3662_p2)
}
   0xb   :  { %s3666_s26 = scalar_lea.vmem %s31_s16, 1024  ;;  %p3671_p4 = scmp.lt.s32.totalorder %s31_s16, %s31_s16 }
   0xc   :  { %p3667_p3 = scmp.ne.s32.totalorder %s31_s16, %s3666_s26  ;;  %p3672_p5 = scmp.lt.s32.totalorder %s3666_s26, %s3666_s26 }
   0xe   :  { %p3673_p6 = por %p3672_p5, %p3671_p4 }
  0x10   :  { %p3674_p7 = pnand %p3673_p6, %p3667_p3 }
  0x12   :  { %3677 = shalt.err (!%p3674_p7)
}
  0x13   :  { %s3766_s27 = smov 128   ;;  %s3767_s28 = smov 8  }
  0x14   :  { %36 = dma.hbm_to_vmem [thread:$0]  %s4250_s1, 1024, %s31_s16, [#allocation7], %s3766_s27, %s3766_s27, %s3767_s28  }
  0x15   :  { %s3678_s7 = scalar_lea.hbm %s4249_s0, 256 }
  0x16   :  { %p3679_p8 = scmp.ne.s32.totalorder %s4249_s0, %s3678_s7  ;;  %p3682_p9 = scmp.lt.u32.totalorder %s3678_s7, %s4249_s0 }
  0x18   :  { %p3684_p10 = pnand %p3682_p9, %p3679_p8 }
  0x1a   :  { %3687 = shalt.err (!%p3684_p10)
}
  0x1b   :  { %s3688_s12 = scalar_lea.vmem %s3805_s18, 256  ;;  %p3693_p12 = scmp.lt.s32.totalorder %s3805_s18, %s3805_s18 }
  0x1c   :  { %p3689_p11 = scmp.ne.s32.totalorder %s3805_s18, %s3688_s12  ;;  %p3694_p13 = scmp.lt.s32.totalorder %s3688_s12, %s3688_s12 }
  0x1e   :  { %p3695_p0 = por %p3694_p13, %p3693_p12 }
  0x20   :  { %p3696_p1 = pnand %p3695_p0, %p3689_p11 }
  0x22   :  { %3699 = shalt.err (!%p3696_p1)
}
  0x23   :  { %24 = dma.hbm_to_vmem [thread:$0]  %s4249_s0, 256, %s3805_s18, [#allocation3], %s3766_s27, %s3766_s27, %s3767_s28  }
  0x24   :  { %s55_s16 = sshll.u32 %s4252_s3, 4  ;;  %s3768_s17 = smov [#allocation8]   ;;  %s56_s16 = int_to_ptr.vmem [resolvable:$true] %s55_s16 }
  0x25   :  { %s42_s19 = sshll.u32 %s3768_s17, 4  ;;  %s3700_s22 = scalar_lea.hbm %s4251_s2, 1024  ;;  %s43_s19 = int_to_ptr.vmem [resolvable:$true] %s42_s19 }
  0x26   :  { %p3701_p2 = scmp.ne.s32.totalorder %s4251_s2, %s3700_s22  ;;  %p3704_p3 = scmp.lt.u32.totalorder %s3700_s22, %s4251_s2 }
  0x28   :  { %p3706_p4 = pnand %p3704_p3, %p3701_p2 }
  0x2a   :  { %3709 = shalt.err (!%p3706_p4)
}
  0x2b   :  { %s3710_s0 = scalar_lea.vmem %s43_s19, 1024  ;;  %p3715_p6 = scmp.lt.s32.totalorder %s43_s19, %s43_s19 }
  0x2c   :  { %p3711_p5 = scmp.ne.s32.totalorder %s43_s19, %s3710_s0  ;;  %p3716_p7 = scmp.lt.s32.totalorder %s3710_s0, %s3710_s0 }
  0x2e   :  { %p3717_p8 = por %p3716_p7, %p3715_p6 }
  0x30   :  { %p3718_p9 = pnand %p3717_p8, %p3711_p5 }
  0x32   :  { %3721 = shalt.err (!%p3718_p9)
}
  0x33   :  { %48 = dma.hbm_to_vmem [thread:$0]  %s4251_s2, 1024, %s43_s19, [#allocation7], %s3766_s27, %s3766_s27, %s3767_s28  }
  0x34   :  { %s3722_s29 = scalar_lea.vmem %s56_s16, 16  ;;  %p3727_p11 = scmp.lt.s32.totalorder %s56_s16, %s56_s16 }
  0x35   :  { %p3723_p10 = scmp.ne.s32.totalorder %s56_s16, %s3722_s29  ;;  %p3728_p12 = scmp.lt.s32.totalorder %s3722_s29, %s3722_s29 }
  0x37   :  { %p3729_p13 = por %p3728_p12, %p3727_p11 }
  0x39   :  { %p3730_p0 = pnand %p3729_p13, %p3723_p10 }
  0x3b   :  { %3733 = shalt.err (!%p3730_p0)
}
  0x3c   :  { %s3769_s30 = smov [#allocation9]  }
  0x3d   :  { %58 = dma.vmem_to_smem %s56_s16, 16, %s3769_s30, [#allocation5]  }
  0x3e   :  { %3756 = dma.done.wait [#allocation3], 256  }
  0x3f   :  { %3757 = vsyncadd [#allocation3], 4294967040 }
  0x40   :  { %3758 = dma.done.wait [#allocation7], 2048  }
  0x41   :  { %3759 = vsyncadd [#allocation7], 4294965248 }
  0x42   :  { %3760 = dma.done.wait [#allocation5], 16  }
  0x43   :  { %3761 = vsyncadd [#allocation5], 4294967280 }
  0x44   :  { %71 = sfence }
  0x45   :  { %v74_v0 = vld [vmem:[#allocation6] sm:$0xff]  ;;  %v75_v1 = vld [vmem:[#allocation6 + $0x8] sm:$0xff]  ;;  %v76_v2 = vld [vmem:[#allocation6 + $0x10] sm:$0xff]  ;;  %vm82_vm0 = vcmask 261120   ;;  %v3770_v8 = vmov 0.0   ;;  %s3771_s2 = smov 112  }
  0x46   :  { %v3536_v3 = vpack.c.bf16 %v75_v1, %v74_v0  ;;  %v77_v4 = vld [vmem:[#allocation6 + $0x18] sm:$0xff]  ;;  %v72_v5 = vld [vmem:[#allocation2] sm:$0xff]  ;;  %3343 = vmatprep.subr.mxu1 %v3770_v8  ;;  %s3772_s5 = smov 120   ;;  %vm3773_vm1 = vmmov 0   ;;  %s3774_s6 = smov 104   ;;  %vm180_vm2 = vcmask 64512  }
  0x47   :  { %v3540_v6 = vpack.c.bf16 %v77_v4, %v76_v2  ;;  %3340 = vmatprep.mubr.msk.f32.mxu0 %vm82_vm0, %v72_v5  ;;  %v73_v7 = vld [vmem:[#allocation2 + $0x8] sm:$0xff]  ;;  %3345 = vmatprep.mubr.msk.f32.mxu1 %vm3773_vm1, %v3770_v8  ;;  %s3775_s7 = smov 96   ;;  %s3776_s8 = smov 64   ;;  %vm1509_vm3 = vcmask 130048   ;;  %vm1512_vm4 = vcmask 195584  }
  0x48   :  { %3537 = vmatprep.subr.bf16.mxu0 %v3536_v3  ;;  %s3777_s9 = smov 16   ;;  %s3778_s10 = smov 24  }
  0x49   :  { %3539 = vmatpush3.bf16.msra.mxu0 %v3536_v3  ;;  %s3152_s11 = sld [smem:[#allocation9]]  ;;  %s3243_s12 = sld [smem:[#allocation9 + $0x1]] }
  0x4a   :  { %3541 = vmatprep.subr.bf16.mxu0 %v3540_v6  ;;  %s3779_s1 = smov [#allocation10]  }
  0x4b   :  { %s3173_s13 = sshll.u32 %s3779_s1, 4  ;;  %s3174_s13 = int_to_ptr.vmem [resolvable:$true] %s3173_s13 }
  0x4c   :  { %s3734_s14 = scalar_lea.vmem %s3174_s13, 256  ;;  %p3739_p2 = scmp.lt.s32.totalorder %s3174_s13, %s3174_s13 }
  0x4d   :  { %3543 = vmatpush3.bf16.msra.mxu0 %v3540_v6  ;;  %p3735_p1 = scmp.ne.s32.totalorder %s3174_s13, %s3734_s14  ;;  %p3740_p3 = scmp.lt.s32.totalorder %s3734_s14, %s3734_s14 }
  0x4e   :  { %3363 = vmatprep.subr.mxu0 %v3770_v8 }
  0x4f   :  { %p3741_p4 = por %p3740_p3, %p3739_p2 }
  0x50   :  { %3341 = vmatmul.mubr.msk.f32.vlgmr.msra.gmra.mrb[0].mxu0 %vm82_vm0, %v73_v7 }
  0x51   :  { %3365 = vmatprep.mubr.msk.f32.mxu0 %vm3773_vm1, %v3770_v8  ;;  %p3742_p5 = pnand %p3741_p4, %p3735_p1 }
 0x123   :  { %v3864_v9 = vpop.f32.mrb[0].mxu0 }
 0x124   :  { %v3866_v10 = vpop.f32.mrb[1].mxu0 }
 0x125   :  { %170 = vrot.lane.b32.xlu1 %v3866_v10, %s3771_s2  ;;  %166 = vrot.lane.b32.xlu0 %v3866_v10, %s3772_s5 }
 0x129   :  { %172 = vrot.lane.b32.xlu1 %v3864_v9, %s3771_s2  ;;  %168 = vrot.lane.b32.xlu0 %v3864_v9, %s3772_s5 }
 0x12d   :  { %176 = vrot.lane.b32.xlu1 %v3864_v9, %s3774_s6  ;;  %174 = vrot.lane.b32.xlu0 %v3866_v10, %s3774_s6 }
 0x131   :  { %255 = vrot.lane.b32.xlu1 %v3864_v9, %s3775_s7  ;;  %178 = vrot.lane.b32.xlu0 %v3866_v10, %s3775_s7 }
 0x197   :  { %v3888_v11 = vpop.permute.xlu1 %170  ;;  %v3890_v12 = vpop.permute.xlu0 %166 }
 0x198   :  { %331 = vrot.lane.b32.xlu0 %v3890_v12, %s3775_s7 }
 0x19b   :  { %v3894_v13 = vpop.permute.xlu1 %172  ;;  %v3896_v14 = vpop.permute.xlu0 %168 }
 0x19c   :  { %483 = vrot.lane.b32.xlu0 %v3888_v11, %s3775_s7  ;;  %407 = vrot.lane.b32.xlu1 %v3896_v14, %s3775_s7 }
 0x19f   :  { %v3902_v15 = vpop.permute.xlu0 %174  ;;  %v3908_v16 = vpop.permute.xlu1 %176 }
 0x1a0   :  { %559 = vrot.lane.b32.xlu1 %v3894_v13, %s3775_s7  ;;  %635 = vrot.lane.b32.xlu0 %v3902_v15, %s3775_s7 }
 0x1a3   :  { %v179_v17 = vpop.permute.xlu0 %178  ;;  %v256_v18 = vpop.permute.xlu1 %255 }
 0x1a4   :  { %711 = vrot.lane.b32.xlu1 %v3908_v16, %s3775_s7  ;;  %3344 = vmatpush3.xpose.msk.msra.mxu1 %vm180_vm2, %v179_v17 }
 0x1a5   :  { %3348 = vmatprep.subr.mxu1 %v3770_v8 }
 0x1a7   :  { %3346 = vmatmul.mubr.msk.f32.vlgmr.msra.gmra.mrb[0].mxu1 %vm180_vm2, %v3866_v10 }
 0x1a8   :  { %3349 = vmatpush3.xpose.msk.msra.mxu1 %vm180_vm2, %v256_v18  ;;  %3350 = vmatprep.mubr.msk.f32.mxu1 %vm3773_vm1, %v3770_v8 }
 0x1a9   :  { %3353 = vmatprep.subr.mxu1 %v3770_v8 }
 0x1ab   :  { %3351 = vmatmul.mubr.msk.f32.vlgmr.msra.gmra.mrb[2].mxu1 %vm180_vm2, %v3864_v9 }
 0x1ac   :  { %3355 = vmatprep.mubr.msk.f32.mxu1 %vm3773_vm1, %v3770_v8 }
 0x20a   :  { %v332_v19 = vpop.permute.xlu0 %331 }
 0x20b   :  { %3354 = vmatpush3.xpose.msk.msra.mxu1 %vm180_vm2, %v332_v19 }
 0x20c   :  { %3358 = vmatprep.subr.mxu1 %v3770_v8 }
 0x20e   :  { %v408_v20 = vpop.permute.xlu1 %407  ;;  %3356 = vmatmul.mubr.msk.f32.vlgmr.msra.gmra.mrb[4].mxu1 %vm180_vm2, %v3890_v12  ;;  %v484_v21 = vpop.permute.xlu0 %483 }
 0x20f   :  { %3359 = vmatpush3.xpose.msk.msra.mxu1 %vm180_vm2, %v408_v20  ;;  %3364 = vmatpush3.xpose.msk.msra.mxu0 %vm180_vm2, %v484_v21 }
 0x210   :  { %3360 = vmatprep.mubr.msk.f32.mxu1 %vm3773_vm1, %v3770_v8  ;;  %3368 = vmatprep.subr.mxu1 %v3770_v8 }
 0x211   :  { %3373 = vmatprep.subr.mxu0 %v3770_v8 }
 0x212   :  { %v560_v22 = vpop.permute.xlu1 %559  ;;  %3361 = vmatmul.mubr.msk.f32.vlgmr.msra.gmra.mrb[6].mxu1 %vm180_vm2, %v3896_v14  ;;  %3366 = vmatmul.mubr.msk.f32.vlgmr.msra.gmra.mrb[2].mxu0 %vm180_vm2, %v3888_v11  ;;  %v636_v23 = vpop.permute.xlu0 %635 }
 0x213   :  { %3369 = vmatpush3.xpose.msk.msra.mxu1 %vm180_vm2, %v560_v22  ;;  %3374 = vmatpush3.xpose.msk.msra.mxu0 %vm180_vm2, %v636_v23 }
 0x214   :  { %3370 = vmatprep.mubr.msk.f32.mxu1 %vm3773_vm1, %v3770_v8  ;;  %3375 = vmatprep.mubr.msk.f32.mxu0 %vm3773_vm1, %v3770_v8 }
 0x215   :  { %3378 = vmatprep.subr.mxu1 %v3770_v8  ;;  %3383 = vmatprep.subr.mxu0 %v3770_v8 }
 0x216   :  { %v712_v24 = vpop.permute.xlu1 %711  ;;  %3371 = vmatmul.mubr.msk.f32.vlgmr.msra.gmra.mrb[8].mxu1 %vm180_vm2, %v3894_v13  ;;  %3376 = vmatmul.mubr.msk.f32.vlgmr.msra.gmra.mrb[4].mxu0 %vm180_vm2, %v3902_v15 }
 0x217   :  { %3379 = vmatpush3.xpose.msk.msra.mxu1 %vm180_vm2, %v712_v24  ;;  %3380 = vmatprep.mubr.msk.f32.mxu1 %vm3773_vm1, %v3770_v8 }
 0x218   :  { %3388 = vmatprep.subr.mxu1 %v3770_v8  ;;  %3385 = vmatprep.mubr.msk.f32.mxu0 %vm3773_vm1, %v3770_v8 }
 0x21a   :  { %3381 = vmatmul.mubr.msk.f32.vlgmr.msra.gmra.mrb[10].mxu1 %vm180_vm2, %v3908_v16 }
 0x21b   :  { %3390 = vmatprep.mubr.msk.f32.mxu1 %vm3773_vm1, %v3770_v8 }
 0x27a   :  { %v251_v25 = vpop.f32.mrb[0].mxu1 }
 0x27b   :  { %v3347_v26 = vpop.f32.mrb[1].mxu1  ;;  %v787_v27 = vsel %vm180_vm2, %v251_v25, -inf }
 0x27c   :  { %788 = vmax.xlane.f32.xlu0 %v787_v27 }
 0x27e   :  { %v327_v28 = vpop.f32.mrb[2].mxu1 }
 0x27f   :  { %v3352_v29 = vpop.f32.mrb[3].mxu1  ;;  %v790_v30 = vsel %vm180_vm2, %v327_v28, -inf }
 0x280   :  { %791 = vmax.xlane.f32.xlu1 %v790_v30 }
 0x2e1   :  { %v403_v31 = vpop.f32.mrb[4].mxu1 }
 0x2e2   :  { %v3357_v32 = vpop.f32.mrb[5].mxu1  ;;  %v793_v33 = vsel %vm180_vm2, %v403_v31, -inf }
 0x2e3   :  { %794 = vmax.xlane.f32.xlu0 %v793_v33 }
 0x2e5   :  { %v479_v34 = vpop.f32.mrb[6].mxu1  ;;  %v555_v35 = vpop.f32.mrb[2].mxu0 }
 0x2e6   :  { %v3362_v36 = vpop.f32.mrb[7].mxu1  ;;  %v3367_v37 = vpop.f32.mrb[3].mxu0  ;;  %v796_v38 = vsel %vm180_vm2, %v479_v34, -inf  ;;  %v799_v39 = vsel %vm180_vm2, %v555_v35, -inf }
 0x2e7   :  { %797 = vmax.xlane.f32.xlu0 %v796_v38  ;;  %800 = vmax.xlane.f32.xlu1 %v799_v39 }
 0x2e9   :  { %v631_v40 = vpop.f32.mrb[8].mxu1  ;;  %v707_v41 = vpop.f32.mrb[4].mxu0 }
 0x2ea   :  { %v3372_v42 = vpop.f32.mrb[9].mxu1  ;;  %v3377_v43 = vpop.f32.mrb[5].mxu0  ;;  %v802_v44 = vsel %vm180_vm2, %v631_v40, -inf  ;;  %v805_v45 = vsel %vm180_vm2, %v707_v41, -inf }
 0x2eb   :  { %803 = vmax.xlane.f32.xlu0 %v802_v44  ;;  %806 = vmax.xlane.f32.xlu1 %v805_v45 }
 0x2ed   :  { %v783_v46 = vpop.f32.mrb[10].mxu1 }
 0x2ee   :  { %v3382_v47 = vpop.f32.mrb[11].mxu1  ;;  %v808_v48 = vsel %vm180_vm2, %v783_v46, -inf }
 0x2ef   :  { %809 = vmax.xlane.f32.xlu0 %v808_v48 }
 0x2fc   :  { %875 = vrot.lane.b32.xlu1 %v3866_v10, %s3776_s8 }
 0x300   :  { %1027 = vrot.lane.b32.xlu1 %v3890_v12, %s3776_s8 }
 0x304   :  { %1103 = vrot.lane.b32.xlu1 %v3896_v14, %s3776_s8 }
 0x305   :  { %951 = vrot.lane.b32.xlu0 %v3864_v9, %s3776_s8 }
 0x308   :  { %1255 = vrot.lane.b32.xlu1 %v3894_v13, %s3776_s8 }
 0x309   :  { %1179 = vrot.lane.b32.xlu0 %v3888_v11, %s3776_s8  ;;  %v789_v51 = vpop.xlane.xlu0 %788 }
 0x30a   :  { %v811_v52 = vsub.f32 %v251_v25, %v789_v51 }
 0x30c   :  { %v819_v54 = vmul.f32 1.442695, %v811_v52 }
 0x30d   :  { %v792_v49 = vpop.xlane.xlu1 %791 }
 0x30e   :  { %v812_v50 = vsub.f32 %v327_v28, %v792_v49 }
 0x310   :  { %v821_v53 = vmul.f32 1.442695, %v812_v50 }
 0x312   :  { %3584 = vpow2.f32 %v821_v53 }
 0x313   :  { %3586 = vpow2.f32 %v819_v54 }
 0x31c   :  { %v3980_v55 = vpop.eup %3584 }
 0x31d   :  { %v838_v56 = vsel %vm180_vm2, %v3980_v55, 0.0  ;;  %v3984_v57 = vpop.eup %3586 }
 0x31e   :  { %v835_v58 = vsel %vm180_vm2, %v3984_v57, 0.0 }
 0x328   :  { %839 = vadd.xlane.f32.xlu0 %v838_v56 }
 0x32c   :  { %836 = vadd.xlane.f32.xlu1 %v835_v58 }
 0x370   :  { %v795_v59 = vpop.xlane.xlu0 %794 }
 0x371   :  { %v813_v60 = vsub.f32 %v403_v31, %v795_v59 }
 0x373   :  { %v823_v61 = vmul.f32 1.442695, %v813_v60 }
 0x374   :  { %v801_v62 = vpop.xlane.xlu1 %800  ;;  %v798_v63 = vpop.xlane.xlu0 %797 }
 0x375   :  { %3588 = vpow2.f32 %v823_v61  ;;  %v815_v0 = vsub.f32 %v555_v35, %v801_v62  ;;  %v814_v1 = vsub.f32 %v479_v34, %v798_v63  ;;  %v78_v62 = vld [vmem:[#allocation8] sm:$0xff]  ;;  %v79_v63 = vld [vmem:[#allocation8 + $0x8] sm:$0xff] }
 0x377   :  { %v827_v2 = vmul.f32 1.442695, %v815_v0  ;;  %v825_v3 = vmul.f32 1.442695, %v814_v1  ;;  %v3544_v0 = vpack.c.bf16 %v79_v63, %v78_v62  ;;  %v80_v1 = vld [vmem:[#allocation8 + $0x10] sm:$0xff] }
 0x378   :  { %v807_v4 = vpop.xlane.xlu1 %806  ;;  %v804_v5 = vpop.xlane.xlu0 %803 }
 0x379   :  { %3590 = vpow2.f32 %v827_v2  ;;  %v817_v6 = vsub.f32 %v707_v41, %v807_v4  ;;  %v816_v7 = vsub.f32 %v631_v40, %v804_v5  ;;  %v81_v2 = vld [vmem:[#allocation8 + $0x18] sm:$0xff] }
 0x37a   :  { %3592 = vpow2.f32 %v825_v3  ;;  %v3548_v3 = vpack.c.bf16 %v81_v2, %v80_v1 }
 0x37b   :  { %v831_v9 = vmul.f32 1.442695, %v817_v6  ;;  %v829_v10 = vmul.f32 1.442695, %v816_v7  ;;  %v1597_v6 = vld [vmem:[#allocation6 + $0x20] sm:$0xff]  ;;  %v1598_v7 = vld [vmem:[#allocation6 + $0x28] sm:$0xff] }
 0x37c   :  { %v876_v11 = vpop.permute.xlu1 %875  ;;  %v810_v12 = vpop.xlane.xlu0 %809 }
 0x37d   :  { %3594 = vpow2.f32 %v831_v9  ;;  %v818_v13 = vsub.f32 %v783_v46, %v810_v12  ;;  %3384 = vmatpush3.msra.mxu0 %v876_v11  ;;  %v1599_v9 = vld [vmem:[#allocation6 + $0x30] sm:$0xff]  ;;  %v1600_v11 = vld [vmem:[#allocation6 + $0x38] sm:$0xff] }
 0x37e   :  { %3596 = vpow2.f32 %v829_v10  ;;  %3393 = vmatprep.subr.mxu0 %v3770_v8  ;;  %v3552_v10 = vpack.c.bf16 %v1598_v7, %v1597_v6 }
 0x37f   :  { %v3589_v14 = vpop.eup %3588  ;;  %v833_v17 = vmul.f32 1.442695, %v818_v13  ;;  %v3556_v13 = vpack.c.bf16 %v1600_v11, %v1599_v9 }
 0x380   :  { %v952_v18 = vpop.permute.xlu0 %951  ;;  %v841_v19 = vsel %vm180_vm2, %v3589_v14, 0.0  ;;  %v1028_v30 = vpop.permute.xlu1 %1027 }
 0x381   :  { %3598 = vpow2.f32 %v833_v17  ;;  %842 = vadd.xlane.f32.xlu1 %v841_v19  ;;  %3389 = vmatpush3.msra.mxu1 %v952_v18 }
 0x382   :  { %3398 = vmatprep.subr.mxu1 %v3770_v8 }
 0x383   :  { %v3591_v20 = vpop.eup %3590 }
 0x384   :  { %v3593_v21 = vpop.eup %3592  ;;  %v847_v22 = vsel %vm180_vm2, %v3591_v20, 0.0  ;;  %v1104_v31 = vpop.permute.xlu1 %1103 }
 0x385   :  { %848 = vadd.xlane.f32.xlu1 %v847_v22  ;;  %v844_v23 = vsel %vm180_vm2, %v3593_v21, 0.0  ;;  %v1180_v32 = vpop.permute.xlu0 %1179 }
 0x386   :  { %845 = vadd.xlane.f32.xlu0 %v844_v23 }
 0x387   :  { %v3595_v24 = vpop.eup %3594 }
 0x388   :  { %v3597_v25 = vpop.eup %3596  ;;  %v853_v26 = vsel %vm180_vm2, %v3595_v24, 0.0  ;;  %v1256_v33 = vpop.permute.xlu1 %1255 }
 0x389   :  { %854 = vadd.xlane.f32.xlu1 %v853_v26  ;;  %v850_v27 = vsel %vm180_vm2, %v3597_v25, 0.0 }
 0x38a   :  { %851 = vadd.xlane.f32.xlu0 %v850_v27 }
 0x38b   :  { %v3995_v28 = vpop.eup %3598 }
 0x38c   :  { %v856_v29 = vsel %vm180_vm2, %v3995_v28, 0.0 }
 0x38e   :  { %857 = vadd.xlane.f32.xlu0 %v856_v29 }
 0x39a   :  { %1407 = vrot.lane.b32.xlu1 %v3908_v16, %s3776_s8 }
 0x3a4   :  { %1331 = vrot.lane.b32.xlu0 %v3902_v15, %s3776_s8 }
 0x3b5   :  { %v840_v34 = vpop.xlane.xlu0 %839 }
 0x3b6   :  { %3600 = vrcp.f32 %v840_v34 }
 0x3b9   :  { %v837_v35 = vpop.xlane.xlu1 %836 }
 0x3ba   :  { %3602 = vrcp.f32 %v837_v35 }
 0x3c0   :  { %v3601_v36 = vpop.eup %3600 }
 0x3c1   :  { %v862_v37 = vmul.f32 %v3601_v36, %v3980_v55 }
 0x3c3   :  { %3391 = vmatmul.mubr.msk.f32.vlgmr.msra.gmra.mrb[12].mxu1 %vm180_vm2, %v862_v37 }
 0x3c4   :  { %v3603_v38 = vpop.eup %3602  ;;  %3399 = vmatpush3.msra.mxu1 %v1104_v31  ;;  %3400 = vmatprep.mubr.msk.f32.mxu1 %vm3773_vm1, %v3770_v8 }
 0x3c5   :  { %v860_v15 = vmul.f32 %v3603_v38, %v3984_v57  ;;  %3408 = vmatprep.subr.mxu1 %v3770_v8 }
 0x3c7   :  { %3386 = vmatmul.mubr.msk.f32.vlgmr.msra.gmra.mrb[6].mxu0 %vm180_vm2, %v860_v15 }
 0x3c8   :  { %3394 = vmatpush3.msra.mxu0 %v1028_v30  ;;  %3395 = vmatprep.mubr.msk.f32.mxu0 %vm3773_vm1, %v3770_v8 }
 0x3c9   :  { %3403 = vmatprep.subr.mxu0 %v3770_v8 }
 0x40e   :  { %v843_v16 = vpop.xlane.xlu1 %842 }
 0x40f   :  { %3604 = vrcp.f32 %v843_v16 }
 0x412   :  { %v849_v39 = vpop.xlane.xlu1 %848 }
 0x413   :  { %3606 = vrcp.f32 %v849_v39  ;;  %v846_v40 = vpop.xlane.xlu0 %845 }
 0x414   :  { %3608 = vrcp.f32 %v846_v40 }
 0x416   :  { %v855_v41 = vpop.xlane.xlu1 %854 }
 0x417   :  { %3610 = vrcp.f32 %v855_v41  ;;  %v852_v42 = vpop.xlane.xlu0 %851 }
 0x418   :  { %3612 = vrcp.f32 %v852_v42 }
 0x419   :  { %v3605_v43 = vpop.eup %3604 }
 0x41a   :  { %v864_v44 = vmul.f32 %v3605_v43, %v3589_v14  ;;  %v1408_v55 = vpop.permute.xlu1 %1407 }
 0x41b   :  { %v858_v45 = vpop.xlane.xlu0 %857 }
 0x41c   :  { %3614 = vrcp.f32 %v858_v45  ;;  %3396 = vmatmul.mubr.msk.f32.vlgmr.msra.gmra.mrb[8].mxu0 %vm180_vm2, %v864_v44 }
 0x41d   :  { %v3607_v46 = vpop.eup %3606  ;;  %3404 = vmatpush3.msra.mxu0 %v1180_v32  ;;  %3405 = vmatprep.mubr.msk.f32.mxu0 %vm3773_vm1, %v3770_v8 }
 0x41e   :  { %v3609_v47 = vpop.eup %3608  ;;  %v868_v48 = vmul.f32 %v3607_v46, %v3591_v20  ;;  %3413 = vmatprep.subr.mxu0 %v3770_v8 }
 0x41f   :  { %v866_v49 = vmul.f32 %v3609_v47, %v3593_v21  ;;  %v1332_v50 = vpop.permute.xlu0 %1331 }
 0x420   :  { %3406 = vmatmul.mubr.msk.f32.vlgmr.msra.gmra.mrb[10].mxu0 %vm180_vm2, %v868_v48 }
 0x421   :  { %v3611_v51 = vpop.eup %3610  ;;  %3401 = vmatmul.mubr.msk.f32.vlgmr.msra.gmra.mrb[14].mxu1 %vm180_vm2, %v866_v49  ;;  %3414 = vmatpush3.msra.mxu0 %v1332_v50 }
 0x422   :  { %v3613_v52 = vpop.eup %3612  ;;  %v872_v53 = vmul.f32 %v3611_v51, %v3595_v24  ;;  %3409 = vmatpush3.msra.mxu1 %v1256_v33  ;;  %3410 = vmatprep.mubr.msk.f32.mxu1 %vm3773_vm1, %v3770_v8 }
 0x423   :  { %v870_v54 = vmul.f32 %v3613_v52, %v3597_v25  ;;  %3415 = vmatprep.mubr.msk.f32.mxu0 %vm3773_vm1, %v3770_v8  ;;  %3418 = vmatprep.subr.mxu1 %v3770_v8 }
 0x424   :  { %3416 = vmatmul.mubr.msk.f32.vlgmr.msra.gmra.mrb[12].mxu0 %vm180_vm2, %v872_v53  ;;  %3545 = vmatprep.subr.bf16.mxu0 %v3544_v0 }
 0x425   :  { %3411 = vmatmul.mubr.msk.f32.vlgmr.msra.gmra.mrb[16].mxu1 %vm180_vm2, %v870_v54  ;;  %3547 = vmatpush3.bf16.msra.mxu0 %v3544_v0 }
 0x426   :  { %v3615_v56 = vpop.eup %3614  ;;  %3419 = vmatpush3.msra.mxu1 %v1408_v55  ;;  %3420 = vmatprep.mubr.msk.f32.mxu1 %vm3773_vm1, %v3770_v8 }
 0x427   :  { %v874_v57 = vmul.f32 %v3615_v56, %v3995_v28  ;;  %3549 = vmatprep.subr.bf16.mxu0 %v3548_v3  ;;  %3553 = vmatprep.subr.bf16.mxu1 %v3552_v10 }
 0x429   :  { %3421 = vmatmul.mubr.msk.f32.vlgmr.msra.gmra.mrb[18].mxu1 %vm180_vm2, %v874_v57  ;;  %3551 = vmatpush3.bf16.msra.mxu0 %v3548_v3 }
 0x42a   :  { %3445 = vmatprep.subr.mxu0 %v3770_v8  ;;  %3555 = vmatpush3.bf16.msra.mxu1 %v3552_v10 }
 0x42b   :  { %3557 = vmatprep.subr.bf16.mxu1 %v3556_v13 }
 0x42e   :  { %3559 = vmatpush3.bf16.msra.mxu1 %v3556_v13 }
 0x42f   :  { %3450 = vmatprep.subr.mxu1 %v3770_v8 }
 0x496   :  { %v1023_v58 = vpop.f32.mrb[12].mxu1 }
 0x497   :  { %v3392_v59 = vpop.f32.mrb[13].mxu1 }
 0x49a   :  { %v947_v60 = vpop.f32.mrb[6].mxu0 }
 0x49b   :  { %v3387_v61 = vpop.f32.mrb[7].mxu0 }
 0x4ef   :  { %v1099_v4 = vpop.f32.mrb[8].mxu0 }
 0x4f0   :  { %v3397_v5 = vpop.f32.mrb[9].mxu0  ;;  %1485 = vrot.lane.b32.xlu0 %v1099_v4, %s3767_s28 }
 0x4f3   :  { %v1251_v12 = vpop.f32.mrb[10].mxu0 }
 0x4f4   :  { %v1175_v14 = vpop.f32.mrb[14].mxu1  ;;  %1493 = vrot.lane.b32.xlu0 %v1251_v12, %s3777_s9  ;;  %v3407_v17 = vpop.f32.mrb[11].mxu0 }
 0x4f5   :  { %1487 = vrot.lane.b32.xlu1 %v1175_v14, %s3767_s28  ;;  %v3402_v18 = vpop.f32.mrb[15].mxu1 }
 0x4f7   :  { %v1403_v19 = vpop.f32.mrb[12].mxu0 }
 0x4f8   :  { %v1327_v20 = vpop.f32.mrb[16].mxu1  ;;  %1501 = vrot.lane.b32.xlu0 %v1403_v19, %s3778_s10  ;;  %v3417_v21 = vpop.f32.mrb[13].mxu0 }
 0x4f9   :  { %1495 = vrot.lane.b32.xlu1 %v1327_v20, %s3777_s9  ;;  %v3412_v22 = vpop.f32.mrb[17].mxu1 }
 0x4fc   :  { %v1479_v23 = vpop.f32.mrb[18].mxu1 }
 0x4fd   :  { %1503 = vrot.lane.b32.xlu1 %v1479_v23, %s3778_s10  ;;  %v3422_v24 = vpop.f32.mrb[19].mxu1 }
 0x562   :  { %v1486_v25 = vpop.permute.xlu0 %1485 }
 0x563   :  { %v1507_v28 = vsel %vm180_vm2, %v947_v60, %v1486_v25 }
 0x566   :  { %v1494_v26 = vpop.permute.xlu0 %1493 }
 0x567   :  { %v1488_v27 = vpop.permute.xlu1 %1487  ;;  %v1510_v29 = vsel %vm1509_vm3, %v1507_v28, %v1494_v26 }
 0x568   :  { %v1508_v33 = vsel %vm180_vm2, %v1023_v58, %v1488_v27 }
 0x56a   :  { %v1502_v30 = vpop.permute.xlu0 %1501 }
 0x56b   :  { %v1496_v31 = vpop.permute.xlu1 %1495  ;;  %v1513_v32 = vsel %vm1512_vm4, %v1510_v29, %v1502_v30 }
 0x56c   :  { %3431 = vmatprep.mubr.msk.f32.mxu0 %vm82_vm0, %v1513_v32  ;;  %v1511_v34 = vsel %vm1509_vm3, %v1508_v33, %v1496_v31 }
 0x56f   :  { %v1504_v35 = vpop.permute.xlu1 %1503 }
 0x570   :  { %v1514_v36 = vsel %vm1512_vm4, %v1511_v34, %v1504_v35 }
 0x571   :  { %3432 = vmatmul.mubr.msk.f32.vlgmr.msra.gmra.mrb[14].mxu0 %vm82_vm0, %v1514_v36 }
 0x572   :  { %3447 = vmatprep.mubr.msk.f32.mxu0 %vm3773_vm1, %v3770_v8 }
 0x644   :  { %v3433_v37 = vpop.f32.mrb[14].mxu0 }
 0x645   :  { %v1587_v38 = vpop.f32.mrb[15].mxu0 }
 0x646   :  { %3442 = vmatprep.mubr.msk.f32.mxu1 %vm82_vm0, %v1587_v38 }
 0x647   :  { %3443 = vmatmul.mubr.msk.f32.vlgmr.msra.gmra.mrb[20].mxu1 %vm82_vm0, %v3433_v37 }
 0x648   :  { %3452 = vmatprep.mubr.msk.f32.mxu1 %vm3773_vm1, %v3770_v8 }
 0x71a   :  { %v4052_v15 = vpop.f32.mrb[20].mxu1 }
 0x71b   :  { %1691 = vrot.lane.b32.xlu1 %v4052_v15, %s3772_s5  ;;  %v4056_v16 = vpop.f32.mrb[21].mxu1 }
 0x71c   :  { %1689 = vrot.lane.b32.xlu0 %v4056_v16, %s3772_s5 }
 0x71f   :  { %1695 = vrot.lane.b32.xlu1 %v4052_v15, %s3771_s2 }
 0x720   :  { %1693 = vrot.lane.b32.xlu0 %v4056_v16, %s3771_s2 }
 0x723   :  { %1699 = vrot.lane.b32.xlu1 %v4052_v15, %s3774_s6 }
 0x724   :  { %1697 = vrot.lane.b32.xlu0 %v4056_v16, %s3774_s6 }
 0x727   :  { %1777 = vrot.lane.b32.xlu1 %v4052_v15, %s3775_s7 }
 0x728   :  { %1701 = vrot.lane.b32.xlu0 %v4056_v16, %s3775_s7 }
 0x78d   :  { %v4072_v39 = vpop.permute.xlu1 %1691 }
 0x78e   :  { %1929 = vrot.lane.b32.xlu1 %v4072_v39, %s3775_s7  ;;  %v4076_v40 = vpop.permute.xlu0 %1689 }
 0x78f   :  { %1853 = vrot.lane.b32.xlu0 %v4076_v40, %s3775_s7 }
 0x791   :  { %v4080_v41 = vpop.permute.xlu1 %1695 }
 0x792   :  { %2081 = vrot.lane.b32.xlu1 %v4080_v41, %s3775_s7  ;;  %v4084_v42 = vpop.permute.xlu0 %1693 }
 0x793   :  { %2005 = vrot.lane.b32.xlu0 %v4084_v42, %s3775_s7 }
 0x795   :  { %v4088_v43 = vpop.permute.xlu1 %1699 }
 0x796   :  { %2233 = vrot.lane.b32.xlu1 %v4088_v43, %s3775_s7  ;;  %v4092_v44 = vpop.permute.xlu0 %1697 }
 0x797   :  { %2157 = vrot.lane.b32.xlu0 %v4092_v44, %s3775_s7 }
 0x799   :  { %v1778_v45 = vpop.permute.xlu1 %1777 }
 0x79a   :  { %3451 = vmatpush3.xpose.msk.msra.mxu1 %vm180_vm2, %v1778_v45  ;;  %v1702_v46 = vpop.permute.xlu0 %1701 }
 0x79b   :  { %3446 = vmatpush3.xpose.msk.msra.mxu0 %vm180_vm2, %v1702_v46  ;;  %3460 = vmatprep.subr.mxu1 %v3770_v8 }
 0x79c   :  { %3455 = vmatprep.subr.mxu0 %v3770_v8 }
 0x79d   :  { %3453 = vmatmul.mubr.msk.f32.vlgmr.msra.gmra.mrb[22].mxu1 %vm180_vm2, %v4052_v15 }
 0x79e   :  { %3448 = vmatmul.mubr.msk.f32.vlgmr.msra.gmra.mrb[16].mxu0 %vm180_vm2, %v4056_v16  ;;  %3462 = vmatprep.mubr.msk.f32.mxu1 %vm3773_vm1, %v3770_v8 }
 0x79f   :  { %3457 = vmatprep.mubr.msk.f32.mxu0 %vm3773_vm1, %v3770_v8 }
 0x800   :  { %v1930_v47 = vpop.permute.xlu1 %1929 }
 0x801   :  { %3461 = vmatpush3.xpose.msk.msra.mxu1 %vm180_vm2, %v1930_v47  ;;  %v1854_v48 = vpop.permute.xlu0 %1853 }
 0x802   :  { %3456 = vmatpush3.xpose.msk.msra.mxu0 %vm180_vm2, %v1854_v48  ;;  %3470 = vmatprep.subr.mxu1 %v3770_v8 }
 0x803   :  { %3465 = vmatprep.subr.mxu0 %v3770_v8 }
 0x804   :  { %3463 = vmatmul.mubr.msk.f32.vlgmr.msra.gmra.mrb[24].mxu1 %vm180_vm2, %v4072_v39  ;;  %v2082_v49 = vpop.permute.xlu1 %2081 }
 0x805   :  { %3458 = vmatmul.mubr.msk.f32.vlgmr.msra.gmra.mrb[18].mxu0 %vm180_vm2, %v4076_v40  ;;  %3471 = vmatpush3.xpose.msk.msra.mxu1 %vm180_vm2, %v2082_v49  ;;  %v2006_v50 = vpop.permute.xlu0 %2005 }
 0x806   :  { %3466 = vmatpush3.xpose.msk.msra.mxu0 %vm180_vm2, %v2006_v50  ;;  %3472 = vmatprep.mubr.msk.f32.mxu1 %vm3773_vm1, %v3770_v8 }
 0x807   :  { %3480 = vmatprep.subr.mxu1 %v3770_v8  ;;  %3467 = vmatprep.mubr.msk.f32.mxu0 %vm3773_vm1, %v3770_v8 }
 0x808   :  { %3473 = vmatmul.mubr.msk.f32.vlgmr.msra.gmra.mrb[26].mxu1 %vm180_vm2, %v4080_v41  ;;  %v2234_v51 = vpop.permute.xlu1 %2233  ;;  %3475 = vmatprep.subr.mxu0 %v3770_v8 }
 0x809   :  { %3468 = vmatmul.mubr.msk.f32.vlgmr.msra.gmra.mrb[20].mxu0 %vm180_vm2, %v4084_v42  ;;  %3481 = vmatpush3.xpose.msk.msra.mxu1 %vm180_vm2, %v2234_v51  ;;  %v2158_v52 = vpop.permute.xlu0 %2157 }
 0x80a   :  { %3476 = vmatpush3.xpose.msk.msra.mxu0 %vm180_vm2, %v2158_v52  ;;  %3482 = vmatprep.mubr.msk.f32.mxu1 %vm3773_vm1, %v3770_v8 }
 0x80b   :  { %3477 = vmatprep.mubr.msk.f32.mxu0 %vm3773_vm1, %v3770_v8  ;;  %3485 = vmatprep.subr.mxu0 %v3770_v8 }
 0x80c   :  { %3483 = vmatmul.mubr.msk.f32.vlgmr.msra.gmra.mrb[28].mxu1 %vm180_vm2, %v4088_v43  ;;  %3490 = vmatprep.subr.mxu1 %v3770_v8 }
 0x80d   :  { %3478 = vmatmul.mubr.msk.f32.vlgmr.msra.gmra.mrb[22].mxu0 %vm180_vm2, %v4092_v44  ;;  %3492 = vmatprep.mubr.msk.f32.mxu1 %vm3773_vm1, %v3770_v8 }
 0x80e   :  { %3487 = vmatprep.mubr.msk.f32.mxu0 %vm3773_vm1, %v3770_v8 }
 0x870   :  { %v1849_v53 = vpop.f32.mrb[22].mxu1 }
 0x871   :  { %v1773_v54 = vpop.f32.mrb[16].mxu0  ;;  %v3454_v55 = vpop.f32.mrb[23].mxu1  ;;  %v2312_v56 = vsel %vm180_vm2, %v1849_v53, -inf }
 0x872   :  { %v3449_v57 = vpop.f32.mrb[17].mxu0  ;;  %2313 = vmax.xlane.f32.xlu1 %v2312_v56  ;;  %v2309_v58 = vsel %vm180_vm2, %v1773_v54, -inf }
 0x873   :  { %2310 = vmax.xlane.f32.xlu0 %v2309_v58 }
 0x8d7   :  { %v2001_v59 = vpop.f32.mrb[24].mxu1 }
 0x8d8   :  { %v1925_v60 = vpop.f32.mrb[18].mxu0  ;;  %v3464_v61 = vpop.f32.mrb[25].mxu1  ;;  %v2318_v5 = vsel %vm180_vm2, %v2001_v59, -inf }
 0x8d9   :  { %v3459_v62 = vpop.f32.mrb[19].mxu0  ;;  %v2315_v63 = vsel %vm180_vm2, %v1925_v60, -inf }
 0x8da   :  { %2316 = vmax.xlane.f32.xlu0 %v2315_v63 }
 0x8db   :  { %v2153_v0 = vpop.f32.mrb[26].mxu1 }
 0x8dc   :  { %v2077_v1 = vpop.f32.mrb[20].mxu0  ;;  %v3474_v2 = vpop.f32.mrb[27].mxu1  ;;  %v2324_v12 = vsel %vm180_vm2, %v2153_v0, -inf }
 0x8dd   :  { %v3469_v3 = vpop.f32.mrb[21].mxu0  ;;  %v2321_v4 = vsel %vm180_vm2, %v2077_v1, -inf }
 0x8de   :  { %2322 = vmax.xlane.f32.xlu1 %v2321_v4  ;;  %2319 = vmax.xlane.f32.xlu0 %v2318_v5 }
 0x8df   :  { %v2305_v6 = vpop.f32.mrb[28].mxu1 }
 0x8e0   :  { %v2229_v7 = vpop.f32.mrb[22].mxu0  ;;  %v3484_v9 = vpop.f32.mrb[29].mxu1  ;;  %v2330_v13 = vsel %vm180_vm2, %v2305_v6, -inf }
 0x8e1   :  { %v3479_v10 = vpop.f32.mrb[23].mxu0  ;;  %v2327_v11 = vsel %vm180_vm2, %v2229_v7, -inf }
 0x8e2   :  { %2328 = vmax.xlane.f32.xlu1 %v2327_v11  ;;  %2325 = vmax.xlane.f32.xlu0 %v2324_v12 }
 0x8e6   :  { %2331 = vmax.xlane.f32.xlu0 %v2330_v13 }
 0x8f3   :  { %2397 = vrot.lane.b32.xlu1 %v4056_v16, %s3776_s8 }
 0x8f7   :  { %2549 = vrot.lane.b32.xlu1 %v4076_v40, %s3776_s8 }
 0x8fb   :  { %2625 = vrot.lane.b32.xlu1 %v4072_v39, %s3776_s8 }
 0x8fc   :  { %2473 = vrot.lane.b32.xlu0 %v4052_v15, %s3776_s8 }
 0x8ff   :  { %2777 = vrot.lane.b32.xlu1 %v4080_v41, %s3776_s8  ;;  %v2314_v14 = vpop.xlane.xlu1 %2313 }
 0x900   :  { %2701 = vrot.lane.b32.xlu0 %v4084_v42, %s3776_s8  ;;  %v2334_v17 = vsub.f32 %v1849_v53, %v2314_v14  ;;  %v2311_v18 = vpop.xlane.xlu0 %2310 }
 0x901   :  { %v2333_v20 = vsub.f32 %v1773_v54, %v2311_v18 }
 0x902   :  { %v2343_v19 = vmul.f32 1.442695, %v2334_v17 }
 0x903   :  { %v2341_v21 = vmul.f32 1.442695, %v2333_v20 }
 0x904   :  { %3616 = vpow2.f32 %v2343_v19 }
 0x905   :  { %3618 = vpow2.f32 %v2341_v21 }
 0x90e   :  { %v4164_v22 = vpop.eup %3616 }
 0x90f   :  { %v2360_v23 = vsel %vm180_vm2, %v4164_v22, 0.0  ;;  %v4168_v24 = vpop.eup %3618 }
 0x910   :  { %v2357_v25 = vsel %vm180_vm2, %v4168_v24, 0.0 }
 0x91f   :  { %2361 = vadd.xlane.f32.xlu0 %v2360_v23 }
 0x923   :  { %2358 = vadd.xlane.f32.xlu1 %v2357_v25 }
 0x967   :  { %v2317_v26 = vpop.xlane.xlu0 %2316 }
 0x968   :  { %v2335_v27 = vsub.f32 %v1925_v60, %v2317_v26 }
 0x96a   :  { %v2345_v28 = vmul.f32 1.442695, %v2335_v27 }
 0x96b   :  { %v2323_v29 = vpop.xlane.xlu1 %2322  ;;  %v2320_v30 = vpop.xlane.xlu0 %2319 }
 0x96c   :  { %3620 = vpow2.f32 %v2345_v28  ;;  %v2337_v31 = vsub.f32 %v2077_v1, %v2323_v29  ;;  %v2336_v32 = vsub.f32 %v2001_v59, %v2320_v30  ;;  %v1602_v29 = vld [vmem:[#allocation8 + $0x20] sm:$0xff]  ;;  %v1603_v30 = vld [vmem:[#allocation8 + $0x28] sm:$0xff] }
 0x96e   :  { %v2349_v33 = vmul.f32 1.442695, %v2337_v31  ;;  %v2347_v34 = vmul.f32 1.442695, %v2336_v32  ;;  %v3560_v31 = vpack.c.bf16 %v1603_v30, %v1602_v29  ;;  %v1604_v32 = vld [vmem:[#allocation8 + $0x30] sm:$0xff] }
 0x96f   :  { %v2329_v35 = vpop.xlane.xlu1 %2328  ;;  %v2326_v36 = vpop.xlane.xlu0 %2325 }
 0x970   :  { %3622 = vpow2.f32 %v2349_v33  ;;  %v2339_v37 = vsub.f32 %v2229_v7, %v2329_v35  ;;  %v2338_v38 = vsub.f32 %v2153_v0, %v2326_v36  ;;  %v1605_v33 = vld [vmem:[#allocation8 + $0x38] sm:$0xff] }
 0x971   :  { %3624 = vpow2.f32 %v2347_v34  ;;  %v3564_v34 = vpack.c.bf16 %v1605_v33, %v1604_v32 }
 0x972   :  { %v2353_v15 = vmul.f32 1.442695, %v2339_v37  ;;  %v2351_v16 = vmul.f32 1.442695, %v2338_v38 }
 0x973   :  { %v2398_v39 = vpop.permute.xlu1 %2397  ;;  %v2332_v40 = vpop.xlane.xlu0 %2331 }
 0x974   :  { %3626 = vpow2.f32 %v2353_v15  ;;  %v2340_v41 = vsub.f32 %v2305_v6, %v2332_v40  ;;  %3486 = vmatpush3.msra.mxu0 %v2398_v39 }
 0x975   :  { %3628 = vpow2.f32 %v2351_v16  ;;  %3495 = vmatprep.subr.mxu0 %v3770_v8 }
 0x976   :  { %v3621_v42 = vpop.eup %3620  ;;  %v2355_v45 = vmul.f32 1.442695, %v2340_v41 }
 0x977   :  { %v2474_v46 = vpop.permute.xlu0 %2473  ;;  %v2363_v47 = vsel %vm180_vm2, %v3621_v42, 0.0  ;;  %v2550_v58 = vpop.permute.xlu1 %2549 }
 0x978   :  { %3630 = vpow2.f32 %v2355_v45  ;;  %2364 = vadd.xlane.f32.xlu1 %v2363_v47  ;;  %3491 = vmatpush3.msra.mxu1 %v2474_v46 }
 0x979   :  { %3500 = vmatprep.subr.mxu1 %v3770_v8 }
 0x97a   :  { %v3623_v48 = vpop.eup %3622 }
 0x97b   :  { %v3625_v49 = vpop.eup %3624  ;;  %v2369_v50 = vsel %vm180_vm2, %v3623_v48, 0.0  ;;  %v2626_v59 = vpop.permute.xlu1 %2625 }
 0x97c   :  { %2370 = vadd.xlane.f32.xlu1 %v2369_v50  ;;  %v2366_v51 = vsel %vm180_vm2, %v3625_v49, 0.0  ;;  %v2702_v60 = vpop.permute.xlu0 %2701 }
 0x97d   :  { %2367 = vadd.xlane.f32.xlu0 %v2366_v51 }
 0x97e   :  { %v3627_v52 = vpop.eup %3626 }
 0x97f   :  { %v3629_v53 = vpop.eup %3628  ;;  %v2375_v54 = vsel %vm180_vm2, %v3627_v52, 0.0  ;;  %v2778_v61 = vpop.permute.xlu1 %2777 }
 0x980   :  { %2376 = vadd.xlane.f32.xlu1 %v2375_v54  ;;  %v2372_v55 = vsel %vm180_vm2, %v3629_v53, 0.0 }
 0x981   :  { %2373 = vadd.xlane.f32.xlu0 %v2372_v55 }
 0x982   :  { %v4179_v56 = vpop.eup %3630 }
 0x983   :  { %v2378_v57 = vsel %vm180_vm2, %v4179_v56, 0.0 }
 0x985   :  { %2379 = vadd.xlane.f32.xlu0 %v2378_v57 }
 0x991   :  { %2929 = vrot.lane.b32.xlu1 %v4088_v43, %s3776_s8 }
 0x99b   :  { %2853 = vrot.lane.b32.xlu0 %v4092_v44, %s3776_s8 }
 0x9ac   :  { %v2362_v62 = vpop.xlane.xlu0 %2361 }
 0x9ad   :  { %3632 = vrcp.f32 %v2362_v62 }
 0x9b0   :  { %v2359_v63 = vpop.xlane.xlu1 %2358 }
 0x9b1   :  { %3634 = vrcp.f32 %v2359_v63 }
 0x9b7   :  { %v3633_v0 = vpop.eup %3632 }
 0x9b8   :  { %v2384_v1 = vmul.f32 %v3633_v0, %v4164_v22 }
 0x9ba   :  { %3493 = vmatmul.mubr.msk.f32.vlgmr.msra.gmra.mrb[30].mxu1 %vm180_vm2, %v2384_v1 }
 0x9bb   :  { %v3635_v2 = vpop.eup %3634  ;;  %3501 = vmatpush3.msra.mxu1 %v2626_v59  ;;  %3502 = vmatprep.mubr.msk.f32.mxu1 %vm3773_vm1, %v3770_v8 }
 0x9bc   :  { %v2382_v43 = vmul.f32 %v3635_v2, %v4168_v24  ;;  %3510 = vmatprep.subr.mxu1 %v3770_v8 }
 0x9be   :  { %3488 = vmatmul.mubr.msk.f32.vlgmr.msra.gmra.mrb[24].mxu0 %vm180_vm2, %v2382_v43 }
 0x9bf   :  { %3496 = vmatpush3.msra.mxu0 %v2550_v58  ;;  %3497 = vmatprep.mubr.msk.f32.mxu0 %vm3773_vm1, %v3770_v8 }
 0x9c0   :  { %3505 = vmatprep.subr.mxu0 %v3770_v8 }
 0xa05   :  { %v2365_v44 = vpop.xlane.xlu1 %2364 }
 0xa06   :  { %3636 = vrcp.f32 %v2365_v44 }
 0xa09   :  { %v2371_v3 = vpop.xlane.xlu1 %2370 }
 0xa0a   :  { %3638 = vrcp.f32 %v2371_v3  ;;  %v2368_v4 = vpop.xlane.xlu0 %2367 }
 0xa0b   :  { %3640 = vrcp.f32 %v2368_v4 }
 0xa0d   :  { %v2377_v5 = vpop.xlane.xlu1 %2376 }
 0xa0e   :  { %3642 = vrcp.f32 %v2377_v5  ;;  %v2374_v6 = vpop.xlane.xlu0 %2373 }
 0xa0f   :  { %3644 = vrcp.f32 %v2374_v6 }
 0xa10   :  { %v3637_v7 = vpop.eup %3636 }
 0xa11   :  { %v2386_v9 = vmul.f32 %v3637_v7, %v3621_v42  ;;  %v2930_v22 = vpop.permute.xlu1 %2929 }
 0xa12   :  { %v2380_v10 = vpop.xlane.xlu0 %2379 }
 0xa13   :  { %3646 = vrcp.f32 %v2380_v10  ;;  %3498 = vmatmul.mubr.msk.f32.vlgmr.msra.gmra.mrb[26].mxu0 %vm180_vm2, %v2386_v9 }
 0xa14   :  { %v3639_v11 = vpop.eup %3638  ;;  %3506 = vmatpush3.msra.mxu0 %v2702_v60  ;;  %3507 = vmatprep.mubr.msk.f32.mxu0 %vm3773_vm1, %v3770_v8 }
 0xa15   :  { %v3641_v12 = vpop.eup %3640  ;;  %v2390_v13 = vmul.f32 %v3639_v11, %v3623_v48  ;;  %3515 = vmatprep.subr.mxu0 %v3770_v8 }
 0xa16   :  { %v2388_v14 = vmul.f32 %v3641_v12, %v3625_v49  ;;  %v2854_v17 = vpop.permute.xlu0 %2853 }
 0xa17   :  { %3508 = vmatmul.mubr.msk.f32.vlgmr.msra.gmra.mrb[28].mxu0 %vm180_vm2, %v2390_v13 }
 0xa18   :  { %v3643_v18 = vpop.eup %3642  ;;  %3503 = vmatmul.mubr.msk.f32.vlgmr.msra.gmra.mrb[32].mxu1 %vm180_vm2, %v2388_v14  ;;  %3516 = vmatpush3.msra.mxu0 %v2854_v17 }
 0xa19   :  { %v3645_v19 = vpop.eup %3644  ;;  %v2394_v20 = vmul.f32 %v3643_v18, %v3627_v52  ;;  %3511 = vmatpush3.msra.mxu1 %v2778_v61  ;;  %3512 = vmatprep.mubr.msk.f32.mxu1 %vm3773_vm1, %v3770_v8 }
 0xa1a   :  { %v2392_v21 = vmul.f32 %v3645_v19, %v3629_v53  ;;  %3517 = vmatprep.mubr.msk.f32.mxu0 %vm3773_vm1, %v3770_v8  ;;  %3520 = vmatprep.subr.mxu1 %v3770_v8 }
 0xa1b   :  { %3518 = vmatmul.mubr.msk.f32.vlgmr.msra.gmra.mrb[30].mxu0 %vm180_vm2, %v2394_v20  ;;  %3561 = vmatprep.subr.bf16.mxu0 %v3560_v31 }
 0xa1c   :  { %3513 = vmatmul.mubr.msk.f32.vlgmr.msra.gmra.mrb[34].mxu1 %vm180_vm2, %v2392_v21  ;;  %3563 = vmatpush3.bf16.msra.mxu0 %v3560_v31 }
 0xa1d   :  { %v3647_v23 = vpop.eup %3646  ;;  %3521 = vmatpush3.msra.mxu1 %v2930_v22  ;;  %3522 = vmatprep.mubr.msk.f32.mxu1 %vm3773_vm1, %v3770_v8 }
 0xa1e   :  { %v2396_v24 = vmul.f32 %v3647_v23, %v4179_v56  ;;  %3565 = vmatprep.subr.bf16.mxu0 %v3564_v34 }
 0xa20   :  { %3523 = vmatmul.mubr.msk.f32.vlgmr.msra.gmra.mrb[36].mxu1 %vm180_vm2, %v2396_v24  ;;  %3567 = vmatpush3.bf16.msra.mxu0 %v3564_v34 }
 0xa8d   :  { %v2545_v25 = vpop.f32.mrb[30].mxu1 }
 0xa8e   :  { %v3494_v26 = vpop.f32.mrb[31].mxu1 }
 0xa91   :  { %v2469_v27 = vpop.f32.mrb[24].mxu0 }
 0xa92   :  { %v3489_v28 = vpop.f32.mrb[25].mxu0 }
 0xa93   :  { %v3163_v28 = vstv %s3243_s12 }
 0xae6   :  { %v2621_v35 = vpop.f32.mrb[26].mxu0 }
 0xae7   :  { %v3499_v8 = vpop.f32.mrb[27].mxu0  ;;  %3007 = vrot.lane.b32.xlu0 %v2621_v35, %s3767_s28 }
 0xaea   :  { %v2773_v36 = vpop.f32.mrb[28].mxu0 }
 0xaeb   :  { %v2697_v37 = vpop.f32.mrb[32].mxu1  ;;  %3015 = vrot.lane.b32.xlu0 %v2773_v36, %s3777_s9  ;;  %v3509_v38 = vpop.f32.mrb[29].mxu0 }
 0xaec   :  { %3009 = vrot.lane.b32.xlu1 %v2697_v37, %s3767_s28  ;;  %v3504_v15 = vpop.f32.mrb[33].mxu1 }
 0xaee   :  { %v2925_v16 = vpop.f32.mrb[30].mxu0 }
 0xaef   :  { %v2849_v39 = vpop.f32.mrb[34].mxu1  ;;  %3023 = vrot.lane.b32.xlu0 %v2925_v16, %s3778_s10  ;;  %v3519_v40 = vpop.f32.mrb[31].mxu0 }
 0xaf0   :  { %3017 = vrot.lane.b32.xlu1 %v2849_v39, %s3777_s9  ;;  %v3514_v41 = vpop.f32.mrb[35].mxu1 }
 0xaf3   :  { %v3001_v42 = vpop.f32.mrb[36].mxu1 }
 0xaf4   :  { %3025 = vrot.lane.b32.xlu1 %v3001_v42, %s3778_s10  ;;  %v3524_v45 = vpop.f32.mrb[37].mxu1 }
 0xb59   :  { %v3008_v46 = vpop.permute.xlu0 %3007 }
 0xb5a   :  { %v3029_v49 = vsel %vm180_vm2, %v2469_v27, %v3008_v46 }
 0xb5d   :  { %v3016_v47 = vpop.permute.xlu0 %3015 }
 0xb5e   :  { %v3010_v48 = vpop.permute.xlu1 %3009  ;;  %v3031_v50 = vsel %vm1509_vm3, %v3029_v49, %v3016_v47 }
 0xb5f   :  { %v3030_v54 = vsel %vm180_vm2, %v2545_v25, %v3010_v48  ;;  %v3154_v25 = vstv %s3152_s11 }
 0xb61   :  { %v3024_v51 = vpop.permute.xlu0 %3023 }
 0xb62   :  { %v3033_v52 = vsel %vm1512_vm4, %v3031_v50, %v3024_v51  ;;  %v3018_v53 = vpop.permute.xlu1 %3017 }
 0xb63   :  { %3533 = vmatprep.mubr.msk.f32.mxu0 %vm82_vm0, %v3033_v52  ;;  %v3032_v55 = vsel %vm1509_vm3, %v3030_v54, %v3018_v53 }
 0xb66   :  { %v3026_v56 = vpop.permute.xlu1 %3025 }
 0xb67   :  { %v3034_v57 = vsel %vm1512_vm4, %v3032_v55, %v3026_v56 }
 0xb68   :  { %3534 = vmatmul.mubr.msk.f32.vlgmr.msra.gmra.mrb[32].mxu0 %vm82_vm0, %v3034_v57 }
 0xc3b   :  { %v3535_v58 = vpop.f32.mrb[32].mxu0 }
 0xc3c   :  { %v3107_v59 = vpop.f32.mrb[33].mxu0  ;;  %v3119_v60 = vsel %vm82_vm0, %v3535_v58, 0.0 }
 0xc3d   :  { %3120 = vadd.xlane.f32.xlu1 %v3119_v60  ;;  %v3116_v61 = vsel %vm82_vm0, %v3107_v59, 0.0 }
 0xc3e   :  { %3117 = vadd.xlane.f32.xlu0 %v3116_v61 }
 0xcca   :  { %v3121_v62 = vpop.xlane.xlu1 %3120 }
 0xccb   :  { %v3124_v63 = vmul.f32 0.03125, %v3121_v62  ;;  %v3118_v0 = vpop.xlane.xlu0 %3117 }
 0xccc   :  { %v3123_v1 = vmul.f32 0.03125, %v3118_v0 }
 0xccd   :  { %v3126_v2 = vsub.f32 %v3535_v58, %v3124_v63 }
 0xcce   :  { %v3125_v43 = vsub.f32 %v3107_v59, %v3123_v1 }
 0xccf   :  { %v3128_v4 = vmul.f32 %v3126_v2, %v3126_v2  ;;  %v3156_v30 = vmul.f32 %v3154_v25, %v3126_v2 }
 0xcd0   :  { %v3127_v44 = vmul.f32 %v3125_v43, %v3125_v43  ;;  %v3155_v26 = vmul.f32 %v3154_v25, %v3125_v43 }
 0xcd1   :  { %v3132_v5 = vsel %vm82_vm0, %v3128_v4, 0.0 }
 0xcd2   :  { %v3129_v3 = vsel %vm82_vm0, %v3127_v44, 0.0 }
 0xcd3   :  { %3130 = vadd.xlane.f32.xlu0 %v3129_v3 }
 0xcd7   :  { %3133 = vadd.xlane.f32.xlu0 %v3132_v5 }
 0xd60   :  { %v3131_v6 = vpop.xlane.xlu0 %3130 }
 0xd61   :  { %v3136_v7 = vmul.f32 0.032258064, %v3131_v6 }
 0xd63   :  { %3648 = vrsqrt.f32 %v3136_v7  ;;  %vm3140_vm5 = vcmp.eq.f32.partialorder %v3136_v7, inf  ;;  %v3143_v13 = vand.u32 2147483648, %v3136_v7  ;;  %vm3142_vm6 = vcmp.eq.f32.partialorder %v3136_v7, 0.0 }
 0xd64   :  { %v3134_v9 = vpop.xlane.xlu0 %3133 }
 0xd65   :  { %v3137_v10 = vmul.f32 0.032258064, %v3134_v9 }
 0xd67   :  { %3650 = vrsqrt.f32 %v3137_v10  ;;  %vm3147_vm7 = vcmp.eq.f32.partialorder %v3137_v10, inf  ;;  %v3150_v21 = vand.u32 2147483648, %v3137_v10  ;;  %vm3149_vm8 = vcmp.eq.f32.partialorder %v3137_v10, 0.0 }
 0xd6d   :  { %v3649_v11 = vpop.eup %3648 }
 0xd6e   :  { %v3139_v12 = vmul.f32 %v3649_v11, %v3136_v7 }
 0xd70   :  { %v3141_v14 = vsel %vm3140_vm5, %v3136_v7, %v3139_v12 }
 0xd71   :  { %v3651_v17 = vpop.eup %3650  ;;  %v3144_v18 = vsel %vm3142_vm6, %v3143_v13, %v3141_v14 }
 0xd72   :  { %v3146_v19 = vmul.f32 %v3651_v17, %v3137_v10  ;;  %v3157_v20 = vadd.f32 1e-06, %v3144_v18 }
 0xd74   :  { %v3148_v22 = vsel %vm3147_vm7, %v3137_v10, %v3146_v19  ;;  %3652 = vrcp.f32 %v3157_v20 }
 0xd75   :  { %v3151_v23 = vsel %vm3149_vm8, %v3150_v21, %v3148_v22 }
 0xd76   :  { %v3158_v24 = vadd.f32 1e-06, %v3151_v23 }
 0xd78   :  { %3654 = vrcp.f32 %v3158_v24 }
 0xd7e   :  { %v3653_v27 = vpop.eup %3652 }
 0xd7f   :  { %v3160_v29 = vmul.f32 %v3653_v27, %v3155_v26 }
 0xd81   :  { %v3164_v31 = vadd.f32 %v3163_v28, %v3160_v29 }
 0xd82   :  { %v3655_v32 = vpop.eup %3654 }
 0xd83   :  { %v3162_v33 = vmul.f32 %v3655_v32, %v3156_v30  ;;  %3166 = vst.msk [vmem:[#allocation10] sm:$0xff] %vm82_vm0, %v3164_v31 }
 0xd85   :  { %v3165_v34 = vadd.f32 %v3163_v28, %v3162_v33 }
 0xd87   :  { %3167 = vst.msk [vmem:[#allocation10 + $0x8] sm:$0xff] %vm82_vm0, %v3165_v34 }
 0xd88   :  { %3745 = shalt.err (!%p3742_p5)
}
 0xd89   :  { %s3746_s17 = scalar_lea.hbm %s4253_s4, 256 }
 0xd8a   :  { %p3747_p6 = scmp.ne.s32.totalorder %s4253_s4, %s3746_s17  ;;  %p3750_p7 = scmp.lt.u32.totalorder %s3746_s17, %s4253_s4 }
 0xd8c   :  { %p3752_p8 = pnand %p3750_p7, %p3747_p6 }
 0xd8e   :  { %3755 = shalt.err (!%p3752_p8)
}
 0xd8f   :  { %3179 = dma.vmem_to_hbm [thread:$0]  %s3174_s13, 256, %s4253_s4, [#allocation4], %s3766_s27, %s3766_s27, %s3767_s28  }
 0xd90   :  { %3762 = dma.done.wait [#allocation4], 256  }
 0xd91   :  { %3763 = vsyncadd [#allocation4], 4294967040 }
 0xd92   :  { %3183 = vsyncpa [#allocation3], 1 }
 0xd93   :  { %3184 = vsyncpa [#allocation7], 1 }
 0xd94   :  { %3185 = vsyncpa [#allocation4], 1 }
 0xd95   :  { %3186 = vsyncpa [#allocation5], 1 }

</bundles_post_ra>
